<compile_context>
chip_gen: v6e
topology: v6e:2x2x1
jax: 0.10.0
libtpu: 0.0.40
codegen_flags: <defaults>
</compile_context>

<pallas_src>
import math

import jax
import jax.numpy as jnp
from jax import lax
from jax.experimental import pallas as pl
from jax.experimental.pallas import tpu as pltpu

# ------------------------- model hyper-parameters --------------------------
BATCH   = 2
TRG_LEN = 8
SRC_LEN = 8
HID_DIM = 32
N_HEADS = 4
PF_DIM  = 64
HEAD_DIM = HID_DIM // N_HEADS
LN_EPS  = 1e-5
NEG_INF = -1e10


# ------------------------------- kernel ------------------------------------
def _layer_norm(x, gamma, beta):
    # x: (R, H); gamma/beta: (1, H); biased variance, like torch.nn.LayerNorm
    mu = jnp.mean(x, axis=-1, keepdims=True)
    var = jnp.mean((x - mu) ** 2, axis=-1, keepdims=True)
    return (x - mu) * lax.rsqrt(var + LN_EPS) * gamma + beta


def _softmax(e):
    m = jnp.max(e, axis=-1, keepdims=True)
    p = jnp.exp(e - m)
    # exact divide for parity with torch.softmax (cost is a handful of cycles
    # at this size; the EUP-approx reciprocal was the only approximation).
    return p / jnp.sum(p, axis=-1, keepdims=True)


def _attention(q, k, v, add_mask, w_o_b, b_o, att_out_ref=None):
    """Batch+head-batched attention core.

    q: (B*nh, Tq, d); k, v: (B*nh, Tk, d); w_o_b: (B*nh, d, H); b_o: (1, H).
    add_mask broadcastable to (B*nh, Tq, Tk).  The 1/sqrt(d) scale is already
    folded into q (via the packed weights).  Returns (B*Tq, H).
    """
    energy = lax.dot_general(q, k, (((2,), (2,)), ((0,), (0,))),
                             preferred_element_type=jnp.float32)   # (B*nh, Tq, Tk)
    energy = energy + add_mask
    attn = _softmax(energy)
    if att_out_ref is not None:
        att_out_ref[...] = attn                                     # one full-ref store
    ctx = lax.dot_general(attn, v, (((2,), (1,)), ((0,), (0,))),
                          preferred_element_type=jnp.float32)       # (B*nh, Tq, d)
    oh = lax.dot_general(ctx, w_o_b, (((2,), (1,)), ((0,), (0,))),
                         preferred_element_type=jnp.float32)        # (B*nh, Tq, H)
    oh = oh.reshape(BATCH, N_HEADS, -1, HID_DIM).sum(axis=1)        # (B, Tq, H)
    return oh.reshape(-1, HID_DIM) + b_o                            # (B*Tq, H)


def decoder_layer_kernel(
    # data
    trg_ref,     # (B, T, H)
    enc_ref,     # (B, S, H)
    tmadd_ref,   # (B*nh, T, T)  additive target mask (0 / -1e10)
    smadd_ref,   # (B*nh, 1, S)  additive source mask (0 / -1e10)
    # packed parameters (weights pre-broadcast over B in the wrapper)
    w_qkv_ref,   # (2, B*nh, H, 3d)   [self-attn | enc-attn], scale folded into Q
    w_o_ref,     # (2, B*nh, d, H)
    hb_ref,      # (2, B*nh, 1, 3d)   per-head qkv biases, scale folded into Q
    wf1_ref,     # (H, PF)
    bf1_ref,     # (1, PF)
    wf2_ref,     # (PF, H)
    vecs_ref,    # (9, H): bo1, bo2, bf2, g1, be1, g2, be2, g3, be3
    # outputs
    out_ref,     # (B*T, H)
    att_ref,     # (B*nh, T, S)
):
    D = HEAD_DIM
    trg3d = trg_ref[...]                                   # (B, T, H)
    enc3d = enc_ref[...]                                   # (B, S, H)
    trg2d = trg3d.reshape(BATCH * TRG_LEN, HID_DIM)        # tile-aligned leading merge

    vecs = vecs_ref[...]
    bo1, bo2, bf2 = vecs[0:1], vecs[1:2], vecs[2:3]
    g1, be1 = vecs[3:4], vecs[4:5]
    g2, be2 = vecs[5:6], vecs[6:7]
    g3, be3 = vecs[7:8], vecs[8:9]

    def bh(x):
        # (B, L, H) -> (B*nh, L, H), batch-major (index = b*nh + h); minor dims
        # untouched so the broadcast/reshape are tile-aligned.
        b, l, h = x.shape
        return jnp.broadcast_to(x[:, None], (b, N_HEADS, l, h)).reshape(b * N_HEADS, l, h)

    # ---- masked multi-head self attention + Add&Norm (dropout = identity) --
    x_bh = bh(trg3d)                                                      # (B*nh, T, H)
    qkv = lax.dot_general(x_bh, w_qkv_ref[0], (((2,), (1,)), ((0,), (0,))),
                          preferred_element_type=jnp.float32) + hb_ref[0]  # (B*nh, T, 3d)
    sa = _attention(qkv[..., :D], qkv[..., D:2 * D], qkv[..., 2 * D:],
                    tmadd_ref[...], w_o_ref[0], bo1)                       # (B*T, H)
    x2d = _layer_norm(trg2d + sa, g1, be1)

    # ---- encoder attention + Add&Norm --------------------------------------
    xq_bh = bh(x2d.reshape(BATCH, TRG_LEN, HID_DIM))                       # (B*nh, T, H)
    enc_bh = bh(enc3d)                                                     # (B*nh, S, H)
    w2 = w_qkv_ref[1]       # (B*nh, H, 3d)
    hb2 = hb_ref[1]         # (B*nh, 1, 3d)
    q2 = lax.dot_general(xq_bh, w2[:, :, :D], (((2,), (1,)), ((0,), (0,))),
                         preferred_element_type=jnp.float32) + hb2[:, :, :D]   # (B*nh, T, d)
    kv2 = lax.dot_general(enc_bh, w2[:, :, D:], (((2,), (1,)), ((0,), (0,))),
                          preferred_element_type=jnp.float32) + hb2[:, :, D:]  # (B*nh, S, 2d)
    ea = _attention(q2, kv2[..., :D], kv2[..., D:],
                    smadd_ref[...], w_o_ref[1], bo2, att_out_ref=att_ref)      # (B*T, H)
    x2d = _layer_norm(x2d + ea, g2, be2)

    # ---- position-wise feed-forward + Add&Norm (B*T = 16-row MXU pushes) ---
    h = jnp.dot(x2d, wf1_ref[...], preferred_element_type=jnp.float32) + bf1_ref[...]
    h = jnp.maximum(h, 0.0)
    ff = jnp.dot(h, wf2_ref[...], preferred_element_type=jnp.float32) + bf2
    out_ref[...] = _layer_norm(x2d + ff, g3, be3)


# --------------------------- parameter packing -------------------------------
def pack_params(params, batch=BATCH):
    """Pack the 26 logical (PyTorch-style) tensors into 7 kernel arrays.

    Per-head attention weights/biases are pre-broadcast over the batch so the
    kernel's (B*nh)-batched dot_generals need no in-kernel weight broadcast.
    """
    (wq1, bq1, wk1, bk1, wv1, bv1, wo1, bo1, g1, be1,
     wq2, bq2, wk2, bk2, wv2, bv2, wo2, bo2, g2, be2,
     wf1, bf1, wf2, bf2, g3, be3) = params
    scale = 1.0 / math.sqrt(HEAD_DIM)

    def heads_w(w):   # (H, H) -> (nh, H, d): head h == w[:, h*d:(h+1)*d]
        return w.reshape(HID_DIM, N_HEADS, HEAD_DIM).transpose(1, 0, 2)

    def heads_b(b):   # (1, H) -> (nh, 1, d)
        return b.reshape(1, N_HEADS, HEAD_DIM).transpose(1, 0, 2)

    def rep(w):       # (nh, ...) -> (batch*nh, ...), batch-major (b*nh + h)
        return jnp.broadcast_to(w[None], (batch,) + w.shape).reshape(
            (batch * w.shape[0],) + w.shape[1:])

    w_qkv1 = jnp.concatenate([heads_w(wq1) * scale, heads_w(wk1), heads_w(wv1)], axis=-1)
    w_qkv2 = jnp.concatenate([heads_w(wq2) * scale, heads_w(wk2), heads_w(wv2)], axis=-1)
    w_qkv = jnp.stack([rep(w_qkv1), rep(w_qkv2)])                    # (2, B*nh, H, 3d)

    hb1 = jnp.concatenate([heads_b(bq1) * scale, heads_b(bk1), heads_b(bv1)], axis=-1)
    hb2 = jnp.concatenate([heads_b(bq2) * scale, heads_b(bk2), heads_b(bv2)], axis=-1)
    hb = jnp.stack([rep(hb1), rep(hb2)])                             # (2, B*nh, 1, 3d)

    w_o = jnp.stack([rep(wo1.reshape(N_HEADS, HEAD_DIM, HID_DIM)),
                     rep(wo2.reshape(N_HEADS, HEAD_DIM, HID_DIM))])  # (2, B*nh, d, H)

    vecs = jnp.concatenate([bo1, bo2, bf2, g1, be1, g2, be2, g3, be3], axis=0)  # (9, H)

    return [w_qkv, w_o, hb, wf1, bf1, wf2, vecs]


# ------------------------------ wrapper -------------------------------------
def decoder_layer(trg, enc_src, trg_mask, src_mask, packed):
    B, T, H = trg.shape
    S = enc_src.shape[1]
    BH = B * N_HEADS

    # Additive masks built once here (wrapper-side XLA), already in the
    # (B*nh, ...) batch-major layout the kernel uses.
    tmask_add = jnp.where(trg_mask == 0, NEG_INF, 0.0).astype(jnp.float32)   # (B,1,T,T)
    tm_bh = jnp.broadcast_to(tmask_add, (B, N_HEADS, T, T)).reshape(BH, T, T)
    smask_add = jnp.where(src_mask == 0, NEG_INF, 0.0).astype(jnp.float32)   # (B,1,1,S)
    sm_bh = jnp.broadcast_to(smask_add, (B, N_HEADS, 1, S)).reshape(BH, 1, S)

    inputs = [trg, enc_src, tm_bh, sm_bh] + list(packed)

    def const_spec(a):
        nd = a.ndim
        return pl.BlockSpec(a.shape, lambda i, _nd=nd: (0,) * _nd)

    out_shapes = (
        jax.ShapeDtypeStruct((B * T, H), jnp.float32),
        jax.ShapeDtypeStruct((BH, T, S), jnp.float32),
    )
    out_specs = (
        pl.BlockSpec((B * T, H), lambda i: (0, 0)),
        pl.BlockSpec((BH, T, S), lambda i: (0, 0, 0)),
    )

    # Single-step grid: the whole (tiny, latency-bound) layer runs in one
    # kernel invocation; batch is folded into the dot_general batch/M dims.
    # On v7x one could shard a batch axis with CORE_PARALLEL instead, but with
    # this short dependent chain a single fused invocation is preferred.
    out2d, att3d = pl.pallas_call(
        decoder_layer_kernel,
        out_shape=out_shapes,
        grid_spec=pltpu.PrefetchScalarGridSpec(
            num_scalar_prefetch=0,
            grid=(1,),
            in_specs=[const_spec(a) for a in inputs],
            out_specs=out_specs,
        ),
        compiler_params=pltpu.CompilerParams(
            dimension_semantics=("arbitrary",),
        ),
    )(*inputs)

    return out2d.reshape(B, T, H), att3d.reshape(B, N_HEADS, T, S)


# ----------------------- pure-JAX reference (for checking) ------------------
def _ref_mha(x_q, x_kv, mask, wq, bq, wk, bk, wv, bv, wo, bo):
    B, Tq, H = x_q.shape
    Tk = x_kv.shape[1]
    q = (x_q @ wq + bq).reshape(B, Tq, N_HEADS, HEAD_DIM).transpose(0, 2, 1, 3)
    k = (x_kv @ wk + bk).reshape(B, Tk, N_HEADS, HEAD_DIM).transpose(0, 2, 1, 3)
    v = (x_kv @ wv + bv).reshape(B, Tk, N_HEADS, HEAD_DIM).transpose(0, 2, 1, 3)
    energy = jnp.einsum("bhqd,bhkd->bhqk", q, k) / math.sqrt(HEAD_DIM)
    energy = jnp.where(mask == 0, NEG_INF, energy)
    attn = jax.nn.softmax(energy, axis=-1)
    x = jnp.einsum("bhqk,bhkd->bhqd", attn, v).transpose(0, 2, 1, 3).reshape(B, Tq, H)
    return x @ wo + bo, attn


def _ref_ln(x, g, b):
    mu = jnp.mean(x, axis=-1, keepdims=True)
    var = jnp.mean((x - mu) ** 2, axis=-1, keepdims=True)
    return (x - mu) / jnp.sqrt(var + LN_EPS) * g + b


def decoder_layer_ref(trg, enc_src, trg_mask, src_mask, params):
    (wq1, bq1, wk1, bk1, wv1, bv1, wo1, bo1, g1, be1,
     wq2, bq2, wk2, bk2, wv2, bv2, wo2, bo2, g2, be2,
     wf1, bf1, wf2, bf2, g3, be3) = params
    sa, _ = _ref_mha(trg, trg, trg_mask, wq1, bq1, wk1, bk1, wv1, bv1, wo1, bo1)
    trg = _ref_ln(trg + sa, g1, be1)
    ea, attn = _ref_mha(trg, enc_src, src_mask, wq2, bq2, wk2, bk2, wv2, bv2, wo2, bo2)
    trg = _ref_ln(trg + ea, g2, be2)
    h = jnp.maximum(trg @ wf1 + bf1, 0.0)
    ff = h @ wf2 + bf2
    trg = _ref_ln(trg + ff, g3, be3)
    return trg, attn


# --------------------------------- main --------------------------------------
def _init_params(key):
    keys = jax.random.split(key, 16)
    def w(k, shape):
        return jax.random.normal(k, shape, jnp.float32) * 0.1
    params = [
        # self-attention
        w(keys[0], (HID_DIM, HID_DIM)), jnp.zeros((1, HID_DIM), jnp.float32),
        w(keys[1], (HID_DIM, HID_DIM)), jnp.zeros((1, HID_DIM), jnp.float32),
        w(keys[2], (HID_DIM, HID_DIM)), jnp.zeros((1, HID_DIM), jnp.float32),
        w(keys[3], (HID_DIM, HID_DIM)), jnp.zeros((1, HID_DIM), jnp.float32),
        jnp.ones((1, HID_DIM), jnp.float32), jnp.zeros((1, HID_DIM), jnp.float32),
        # encoder-attention
        w(keys[4], (HID_DIM, HID_DIM)), jnp.zeros((1, HID_DIM), jnp.float32),
        w(keys[5], (HID_DIM, HID_DIM)), jnp.zeros((1, HID_DIM), jnp.float32),
        w(keys[6], (HID_DIM, HID_DIM)), jnp.zeros((1, HID_DIM), jnp.float32),
        w(keys[7], (HID_DIM, HID_DIM)), jnp.zeros((1, HID_DIM), jnp.float32),
        jnp.ones((1, HID_DIM), jnp.float32), jnp.zeros((1, HID_DIM), jnp.float32),
        # feed-forward
        w(keys[8], (HID_DIM, PF_DIM)), jnp.zeros((1, PF_DIM), jnp.float32),
        w(keys[9], (PF_DIM, HID_DIM)), jnp.zeros((1, HID_DIM), jnp.float32),
        jnp.ones((1, HID_DIM), jnp.float32), jnp.zeros((1, HID_DIM), jnp.float32),
    ]
    return params


if __name__ == "__main__":
    key = jax.random.PRNGKey(0)
    k_trg, k_enc, k_par = jax.random.split(key, 3)

    trg = jax.random.normal(k_trg, (BATCH, TRG_LEN, HID_DIM), jnp.float32)
    enc_src = jax.random.normal(k_enc, (BATCH, SRC_LEN, HID_DIM), jnp.float32)

    # causal target mask: [B, 1, T, T]
    causal = jnp.tril(jnp.ones((TRG_LEN, TRG_LEN), jnp.float32))
    trg_mask = jnp.broadcast_to(causal, (BATCH, 1, TRG_LEN, TRG_LEN))
    # source padding mask: [B, 1, 1, S] (last 2 positions padded)
    src_valid = jnp.concatenate(
        [jnp.ones((SRC_LEN - 2,), jnp.float32), jnp.zeros((2,), jnp.float32)])
    src_mask = jnp.broadcast_to(src_valid, (BATCH, 1, 1, SRC_LEN))

    params = _init_params(k_par)
    packed = pack_params(params)

    out, attn = decoder_layer(trg, enc_src, trg_mask, src_mask, packed)
    jax.block_until_ready((out, attn))

    # sanity check against pure-JAX reference
    out_ref, attn_ref = decoder_layer_ref(trg, enc_src, trg_mask, src_mask, params)
    assert jnp.allclose(out, out_ref, atol=2e-3, rtol=2e-3), "output mismatch"
    assert jnp.allclose(attn, attn_ref, atol=2e-3, rtol=2e-3), "attention mismatch"

    print("KERNEL_OK")
</pallas_src>

<mosaic_0001>
module attributes {stable_mosaic.version = 11 : i64} {
  func.func @decoder_layer_kernel(%arg0: i32, %arg1: memref<2x8x32xf32, #tpu.memory_space<vmem>>, %arg2: memref<2x8x32xf32, #tpu.memory_space<vmem>>, %arg3: memref<8x8x8xf32, #tpu.memory_space<vmem>>, %arg4: memref<8x1x8xf32, #tpu.memory_space<vmem>>, %arg5: memref<2x8x32x24xf32, #tpu.memory_space<vmem>>, %arg6: memref<2x8x8x32xf32, #tpu.memory_space<vmem>>, %arg7: memref<2x8x1x24xf32, #tpu.memory_space<vmem>>, %arg8: memref<32x64xf32, #tpu.memory_space<vmem>>, %arg9: memref<1x64xf32, #tpu.memory_space<vmem>>, %arg10: memref<64x32xf32, #tpu.memory_space<vmem>>, %arg11: memref<9x32xf32, #tpu.memory_space<vmem>>, %arg12: memref<16x32xf32, #tpu.memory_space<vmem>>, %arg13: memref<8x8x8xf32, #tpu.memory_space<vmem>>) attributes {dimension_semantics = [#tpu.dimension_semantics<arbitrary>], iteration_bounds = array<i64: 1>, scalar_prefetch = 0 : i64, scratch_operands = 0 : i64, tpu.core_type = #tpu.core_type<tc>, window_params = [{pipeline_mode = #tpu.pipeline_mode<synchronous>, transform_indices = @transform_0, window_bounds = array<i64: 2, 8, 32>}, {pipeline_mode = #tpu.pipeline_mode<synchronous>, transform_indices = @transform_1, window_bounds = array<i64: 2, 8, 32>}, {pipeline_mode = #tpu.pipeline_mode<synchronous>, transform_indices = @transform_2, window_bounds = array<i64: 8, 8, 8>}, {pipeline_mode = #tpu.pipeline_mode<synchronous>, transform_indices = @transform_3, window_bounds = array<i64: 8, 1, 8>}, {pipeline_mode = #tpu.pipeline_mode<synchronous>, transform_indices = @transform_4, window_bounds = array<i64: 2, 8, 32, 24>}, {pipeline_mode = #tpu.pipeline_mode<synchronous>, transform_indices = @transform_5, window_bounds = array<i64: 2, 8, 8, 32>}, {pipeline_mode = #tpu.pipeline_mode<synchronous>, transform_indices = @transform_6, window_bounds = array<i64: 2, 8, 1, 24>}, {pipeline_mode = #tpu.pipeline_mode<synchronous>, transform_indices = @transform_7, window_bounds = array<i64: 32, 64>}, {pipeline_mode = #tpu.pipeline_mode<synchronous>, transform_indices = @transform_8, window_bounds = array<i64: 1, 64>}, {pipeline_mode = #tpu.pipeline_mode<synchronous>, transform_indices = @transform_9, window_bounds = array<i64: 64, 32>}, {pipeline_mode = #tpu.pipeline_mode<synchronous>, transform_indices = @transform_10, window_bounds = array<i64: 9, 32>}, {pipeline_mode = #tpu.pipeline_mode<synchronous>, transform_indices = @transform_11, window_bounds = array<i64: 16, 32>}, {pipeline_mode = #tpu.pipeline_mode<synchronous>, transform_indices = @transform_12, window_bounds = array<i64: 8, 8, 8>}]} {
    %c0 = arith.constant 0 : index
    %c0_0 = arith.constant 0 : index
    %c0_1 = arith.constant 0 : index
    %0 = vector.load %arg1[%c0, %c0_0, %c0_1] : memref<2x8x32xf32, #tpu.memory_space<vmem>>, vector<2x8x32xf32>
    %c0_2 = arith.constant 0 : index
    %c0_3 = arith.constant 0 : index
    %c0_4 = arith.constant 0 : index
    %1 = vector.load %arg2[%c0_2, %c0_3, %c0_4] : memref<2x8x32xf32, #tpu.memory_space<vmem>>, vector<2x8x32xf32>
    %2 = vector.shape_cast %0 : vector<2x8x32xf32> to vector<16x32xf32>
    %c0_5 = arith.constant 0 : index
    %c0_6 = arith.constant 0 : index
    %3 = vector.load %arg11[%c0_5, %c0_6] : memref<9x32xf32, #tpu.memory_space<vmem>>, vector<9x32xf32>
    %4 = vector.extract_strided_slice %3 {offsets = [0, 0], sizes = [1, 32], strides = [1, 1]} : vector<9x32xf32> to vector<1x32xf32>
    %5 = vector.extract_strided_slice %3 {offsets = [1, 0], sizes = [1, 32], strides = [1, 1]} : vector<9x32xf32> to vector<1x32xf32>
    %6 = vector.extract_strided_slice %3 {offsets = [2, 0], sizes = [1, 32], strides = [1, 1]} : vector<9x32xf32> to vector<1x32xf32>
    %7 = vector.extract_strided_slice %3 {offsets = [3, 0], sizes = [1, 32], strides = [1, 1]} : vector<9x32xf32> to vector<1x32xf32>
    %8 = vector.extract_strided_slice %3 {offsets = [4, 0], sizes = [1, 32], strides = [1, 1]} : vector<9x32xf32> to vector<1x32xf32>
    %9 = vector.extract_strided_slice %3 {offsets = [5, 0], sizes = [1, 32], strides = [1, 1]} : vector<9x32xf32> to vector<1x32xf32>
    %10 = vector.extract_strided_slice %3 {offsets = [6, 0], sizes = [1, 32], strides = [1, 1]} : vector<9x32xf32> to vector<1x32xf32>
    %11 = vector.extract_strided_slice %3 {offsets = [7, 0], sizes = [1, 32], strides = [1, 1]} : vector<9x32xf32> to vector<1x32xf32>
    %12 = vector.extract_strided_slice %3 {offsets = [8, 0], sizes = [1, 32], strides = [1, 1]} : vector<9x32xf32> to vector<1x32xf32>
    %13 = vector.shape_cast %0 : vector<2x8x32xf32> to vector<2x1x8x32xf32>
    %14 = vector.shape_cast %13 : vector<2x1x8x32xf32> to vector<2x1x8x32xf32>
    %15 = vector.broadcast %14 : vector<2x1x8x32xf32> to vector<2x4x8x32xf32>
    %16 = vector.shape_cast %15 : vector<2x4x8x32xf32> to vector<8x8x32xf32>
    %c0_7 = arith.constant 0 : index
    %c0_8 = arith.constant 0 : index
    %c0_9 = arith.constant 0 : index
    %c0_10 = arith.constant 0 : index
    %17 = vector.load %arg5[%c0_7, %c0_8, %c0_9, %c0_10] : memref<2x8x32x24xf32, #tpu.memory_space<vmem>>, vector<1x8x32x24xf32>
    %18 = vector.shape_cast %17 : vector<1x8x32x24xf32> to vector<8x32x24xf32>
    %cst = arith.constant dense<0.000000e+00> : vector<8x8x24xf32>
    %19 = tpu.matmul %16, %18, %cst {dimension_numbers = #tpu.dot_dimension_numbers<[2], [1], [1], [2], [0, 0, 0, 1, 1, 2], [0], [0]>} : vector<8x8x32xf32>, vector<8x32x24xf32>, vector<8x8x24xf32> -> vector<8x8x24xf32>
    %c0_11 = arith.constant 0 : index
    %c0_12 = arith.constant 0 : index
    %c0_13 = arith.constant 0 : index
    %c0_14 = arith.constant 0 : index
    %20 = vector.load %arg7[%c0_11, %c0_12, %c0_13, %c0_14] : memref<2x8x1x24xf32, #tpu.memory_space<vmem>>, vector<1x8x1x24xf32>
    %21 = vector.shape_cast %20 : vector<1x8x1x24xf32> to vector<8x1x24xf32>
    %22 = vector.broadcast %21 : vector<8x1x24xf32> to vector<8x8x24xf32>
    %23 = arith.addf %19, %22 : vector<8x8x24xf32>
    %24 = vector.extract_strided_slice %23 {offsets = [0, 0, 0], sizes = [8, 8, 8], strides = [1, 1, 1]} : vector<8x8x24xf32> to vector<8x8x8xf32>
    %25 = vector.extract_strided_slice %23 {offsets = [0, 0, 8], sizes = [8, 8, 8], strides = [1, 1, 1]} : vector<8x8x24xf32> to vector<8x8x8xf32>
    %26 = vector.extract_strided_slice %23 {offsets = [0, 0, 16], sizes = [8, 8, 8], strides = [1, 1, 1]} : vector<8x8x24xf32> to vector<8x8x8xf32>
    %c0_15 = arith.constant 0 : index
    %c0_16 = arith.constant 0 : index
    %c0_17 = arith.constant 0 : index
    %27 = vector.load %arg3[%c0_15, %c0_16, %c0_17] : memref<8x8x8xf32, #tpu.memory_space<vmem>>, vector<8x8x8xf32>
    %c0_18 = arith.constant 0 : index
    %c0_19 = arith.constant 0 : index
    %c0_20 = arith.constant 0 : index
    %c0_21 = arith.constant 0 : index
    %28 = vector.load %arg6[%c0_18, %c0_19, %c0_20, %c0_21] : memref<2x8x8x32xf32, #tpu.memory_space<vmem>>, vector<1x8x8x32xf32>
    %29 = vector.shape_cast %28 : vector<1x8x8x32xf32> to vector<8x8x32xf32>
    %cst_22 = arith.constant dense<0.000000e+00> : vector<8x8x8xf32>
    %30 = tpu.matmul %24, %25, %cst_22 {dimension_numbers = #tpu.dot_dimension_numbers<[2], [2], [1], [1], [0, 0, 0, 1, 1, 1], [0], [0]>} : vector<8x8x8xf32>, vector<8x8x8xf32>, vector<8x8x8xf32> -> vector<8x8x8xf32>
    %31 = arith.addf %30, %27 : vector<8x8x8xf32>
    %cst_23 = arith.constant dense<0xFF800000> : vector<8x8xf32>
    %32 = vector.multi_reduction <maximumf>, %31, %cst_23 [2] : vector<8x8x8xf32> to vector<8x8xf32>
    %33 = vector.shape_cast %32 : vector<8x8xf32> to vector<8x8x1xf32>
    %34 = vector.broadcast %33 : vector<8x8x1xf32> to vector<8x8x8xf32>
    %35 = arith.subf %31, %34 : vector<8x8x8xf32>
    %36 = math.exp %35 : vector<8x8x8xf32>
    %cst_24 = arith.constant dense<0.000000e+00> : vector<8x8xf32>
    %37 = vector.multi_reduction <add>, %36, %cst_24 [2] : vector<8x8x8xf32> to vector<8x8xf32>
    %38 = vector.shape_cast %37 : vector<8x8xf32> to vector<8x8x1xf32>
    %39 = vector.broadcast %38 : vector<8x8x1xf32> to vector<8x8x8xf32>
    %40 = arith.divf %36, %39 : vector<8x8x8xf32>
    %cst_25 = arith.constant dense<0.000000e+00> : vector<8x8x8xf32>
    %41 = tpu.matmul %40, %26, %cst_25 {dimension_numbers = #tpu.dot_dimension_numbers<[2], [1], [1], [2], [0, 0, 0, 1, 1, 2], [0], [0]>} : vector<8x8x8xf32>, vector<8x8x8xf32>, vector<8x8x8xf32> -> vector<8x8x8xf32>
    %cst_26 = arith.constant dense<0.000000e+00> : vector<8x8x32xf32>
    %42 = tpu.matmul %41, %29, %cst_26 {dimension_numbers = #tpu.dot_dimension_numbers<[2], [1], [1], [2], [0, 0, 0, 1, 1, 2], [0], [0]>} : vector<8x8x8xf32>, vector<8x8x32xf32>, vector<8x8x32xf32> -> vector<8x8x32xf32>
    %43 = vector.shape_cast %42 : vector<8x8x32xf32> to vector<2x4x8x32xf32>
    %cst_27 = arith.constant dense<0.000000e+00> : vector<2x8x32xf32>
    %44 = vector.multi_reduction <add>, %43, %cst_27 [1] : vector<2x4x8x32xf32> to vector<2x8x32xf32>
    %45 = vector.shape_cast %44 : vector<2x8x32xf32> to vector<16x32xf32>
    %46 = vector.broadcast %4 : vector<1x32xf32> to vector<16x32xf32>
    %47 = arith.addf %45, %46 : vector<16x32xf32>
    %48 = arith.addf %2, %47 : vector<16x32xf32>
    %cst_28 = arith.constant dense<0.000000e+00> : vector<16xf32>
    %49 = vector.multi_reduction <add>, %48, %cst_28 [1] : vector<16x32xf32> to vector<16xf32>
    %50 = vector.shape_cast %49 : vector<16xf32> to vector<16x1xf32>
    %cst_29 = arith.constant 3.200000e+01 : f32
    %51 = vector.broadcast %cst_29 : f32 to vector<16x1xf32>
    %52 = arith.divf %50, %51 : vector<16x1xf32>
    %53 = vector.broadcast %52 : vector<16x1xf32> to vector<16x32xf32>
    %54 = arith.subf %48, %53 : vector<16x32xf32>
    %55 = arith.mulf %54, %54 : vector<16x32xf32>
    %cst_30 = arith.constant dense<0.000000e+00> : vector<16xf32>
    %56 = vector.multi_reduction <add>, %55, %cst_30 [1] : vector<16x32xf32> to vector<16xf32>
    %57 = vector.shape_cast %56 : vector<16xf32> to vector<16x1xf32>
    %cst_31 = arith.constant 3.200000e+01 : f32
    %58 = vector.broadcast %cst_31 : f32 to vector<16x1xf32>
    %59 = arith.divf %57, %58 : vector<16x1xf32>
    %60 = vector.broadcast %52 : vector<16x1xf32> to vector<16x32xf32>
    %61 = arith.subf %48, %60 : vector<16x32xf32>
    %cst_32 = arith.constant 9.99999974E-6 : f32
    %62 = vector.broadcast %cst_32 : f32 to vector<16x1xf32>
    %63 = arith.addf %59, %62 : vector<16x1xf32>
    %64 = math.rsqrt %63 : vector<16x1xf32>
    %65 = vector.broadcast %64 : vector<16x1xf32> to vector<16x32xf32>
    %66 = arith.mulf %61, %65 : vector<16x32xf32>
    %67 = vector.broadcast %7 : vector<1x32xf32> to vector<16x32xf32>
    %68 = arith.mulf %66, %67 : vector<16x32xf32>
    %69 = vector.broadcast %8 : vector<1x32xf32> to vector<16x32xf32>
    %70 = arith.addf %68, %69 : vector<16x32xf32>
    %71 = vector.shape_cast %70 : vector<16x32xf32> to vector<2x8x32xf32>
    %72 = vector.shape_cast %71 : vector<2x8x32xf32> to vector<2x1x8x32xf32>
    %73 = vector.shape_cast %72 : vector<2x1x8x32xf32> to vector<2x1x8x32xf32>
    %74 = vector.broadcast %73 : vector<2x1x8x32xf32> to vector<2x4x8x32xf32>
    %75 = vector.shape_cast %74 : vector<2x4x8x32xf32> to vector<8x8x32xf32>
    %76 = vector.shape_cast %1 : vector<2x8x32xf32> to vector<2x1x8x32xf32>
    %77 = vector.shape_cast %76 : vector<2x1x8x32xf32> to vector<2x1x8x32xf32>
    %78 = vector.broadcast %77 : vector<2x1x8x32xf32> to vector<2x4x8x32xf32>
    %79 = vector.shape_cast %78 : vector<2x4x8x32xf32> to vector<8x8x32xf32>
    %c1 = arith.constant 1 : index
    %c0_33 = arith.constant 0 : index
    %c0_34 = arith.constant 0 : index
    %c0_35 = arith.constant 0 : index
    %80 = vector.load %arg5[%c1, %c0_33, %c0_34, %c0_35] : memref<2x8x32x24xf32, #tpu.memory_space<vmem>>, vector<1x8x32x24xf32>
    %81 = vector.shape_cast %80 : vector<1x8x32x24xf32> to vector<8x32x24xf32>
    %c1_36 = arith.constant 1 : index
    %c0_37 = arith.constant 0 : index
    %c0_38 = arith.constant 0 : index
    %c0_39 = arith.constant 0 : index
    %82 = vector.load %arg7[%c1_36, %c0_37, %c0_38, %c0_39] : memref<2x8x1x24xf32, #tpu.memory_space<vmem>>, vector<1x8x1x24xf32>
    %83 = vector.shape_cast %82 : vector<1x8x1x24xf32> to vector<8x1x24xf32>
    %84 = vector.extract_strided_slice %81 {offsets = [0, 0, 0], sizes = [8, 32, 8], strides = [1, 1, 1]} : vector<8x32x24xf32> to vector<8x32x8xf32>
    %cst_40 = arith.constant dense<0.000000e+00> : vector<8x8x8xf32>
    %85 = tpu.matmul %75, %84, %cst_40 {dimension_numbers = #tpu.dot_dimension_numbers<[2], [1], [1], [2], [0, 0, 0, 1, 1, 2], [0], [0]>} : vector<8x8x32xf32>, vector<8x32x8xf32>, vector<8x8x8xf32> -> vector<8x8x8xf32>
    %86 = vector.extract_strided_slice %83 {offsets = [0, 0, 0], sizes = [8, 1, 8], strides = [1, 1, 1]} : vector<8x1x24xf32> to vector<8x1x8xf32>
    %87 = vector.broadcast %86 : vector<8x1x8xf32> to vector<8x8x8xf32>
    %88 = arith.addf %85, %87 : vector<8x8x8xf32>
    %89 = vector.extract_strided_slice %81 {offsets = [0, 0, 8], sizes = [8, 32, 16], strides = [1, 1, 1]} : vector<8x32x24xf32> to vector<8x32x16xf32>
    %cst_41 = arith.constant dense<0.000000e+00> : vector<8x8x16xf32>
    %90 = tpu.matmul %79, %89, %cst_41 {dimension_numbers = #tpu.dot_dimension_numbers<[2], [1], [1], [2], [0, 0, 0, 1, 1, 2], [0], [0]>} : vector<8x8x32xf32>, vector<8x32x16xf32>, vector<8x8x16xf32> -> vector<8x8x16xf32>
    %91 = vector.extract_strided_slice %83 {offsets = [0, 0, 8], sizes = [8, 1, 16], strides = [1, 1, 1]} : vector<8x1x24xf32> to vector<8x1x16xf32>
    %92 = vector.broadcast %91 : vector<8x1x16xf32> to vector<8x8x16xf32>
    %93 = arith.addf %90, %92 : vector<8x8x16xf32>
    %94 = vector.extract_strided_slice %93 {offsets = [0, 0, 0], sizes = [8, 8, 8], strides = [1, 1, 1]} : vector<8x8x16xf32> to vector<8x8x8xf32>
    %95 = vector.extract_strided_slice %93 {offsets = [0, 0, 8], sizes = [8, 8, 8], strides = [1, 1, 1]} : vector<8x8x16xf32> to vector<8x8x8xf32>
    %c0_42 = arith.constant 0 : index
    %c0_43 = arith.constant 0 : index
    %c0_44 = arith.constant 0 : index
    %96 = vector.load %arg4[%c0_42, %c0_43, %c0_44] : memref<8x1x8xf32, #tpu.memory_space<vmem>>, vector<8x1x8xf32>
    %c1_45 = arith.constant 1 : index
    %c0_46 = arith.constant 0 : index
    %c0_47 = arith.constant 0 : index
    %c0_48 = arith.constant 0 : index
    %97 = vector.load %arg6[%c1_45, %c0_46, %c0_47, %c0_48] : memref<2x8x8x32xf32, #tpu.memory_space<vmem>>, vector<1x8x8x32xf32>
    %98 = vector.shape_cast %97 : vector<1x8x8x32xf32> to vector<8x8x32xf32>
    %cst_49 = arith.constant dense<0.000000e+00> : vector<8x8x8xf32>
    %99 = tpu.matmul %88, %94, %cst_49 {dimension_numbers = #tpu.dot_dimension_numbers<[2], [2], [1], [1], [0, 0, 0, 1, 1, 1], [0], [0]>} : vector<8x8x8xf32>, vector<8x8x8xf32>, vector<8x8x8xf32> -> vector<8x8x8xf32>
    %100 = vector.broadcast %96 : vector<8x1x8xf32> to vector<8x8x8xf32>
    %101 = arith.addf %99, %100 : vector<8x8x8xf32>
    %cst_50 = arith.constant dense<0xFF800000> : vector<8x8xf32>
    %102 = vector.multi_reduction <maximumf>, %101, %cst_50 [2] : vector<8x8x8xf32> to vector<8x8xf32>
    %103 = vector.shape_cast %102 : vector<8x8xf32> to vector<8x8x1xf32>
    %104 = vector.broadcast %103 : vector<8x8x1xf32> to vector<8x8x8xf32>
    %105 = arith.subf %101, %104 : vector<8x8x8xf32>
    %106 = math.exp %105 : vector<8x8x8xf32>
    %cst_51 = arith.constant dense<0.000000e+00> : vector<8x8xf32>
    %107 = vector.multi_reduction <add>, %106, %cst_51 [2] : vector<8x8x8xf32> to vector<8x8xf32>
    %108 = vector.shape_cast %107 : vector<8x8xf32> to vector<8x8x1xf32>
    %109 = vector.broadcast %108 : vector<8x8x1xf32> to vector<8x8x8xf32>
    %110 = arith.divf %106, %109 : vector<8x8x8xf32>
    %c0_52 = arith.constant 0 : index
    %c0_53 = arith.constant 0 : index
    %c0_54 = arith.constant 0 : index
    %111 = vector.load %arg13[%c0_52, %c0_53, %c0_54] : memref<8x8x8xf32, #tpu.memory_space<vmem>>, vector<8x8x8xf32>
    tpu.vector_store %arg13[%c0_52, %c0_53, %c0_54], %110 {strides = array<i32>} : memref<8x8x8xf32, #tpu.memory_space<vmem>>, vector<8x8x8xf32>,
    %cst_55 = arith.constant dense<0.000000e+00> : vector<8x8x8xf32>
    %112 = tpu.matmul %110, %95, %cst_55 {dimension_numbers = #tpu.dot_dimension_numbers<[2], [1], [1], [2], [0, 0, 0, 1, 1, 2], [0], [0]>} : vector<8x8x8xf32>, vector<8x8x8xf32>, vector<8x8x8xf32> -> vector<8x8x8xf32>
    %cst_56 = arith.constant dense<0.000000e+00> : vector<8x8x32xf32>
    %113 = tpu.matmul %112, %98, %cst_56 {dimension_numbers = #tpu.dot_dimension_numbers<[2], [1], [1], [2], [0, 0, 0, 1, 1, 2], [0], [0]>} : vector<8x8x8xf32>, vector<8x8x32xf32>, vector<8x8x32xf32> -> vector<8x8x32xf32>
    %114 = vector.shape_cast %113 : vector<8x8x32xf32> to vector<2x4x8x32xf32>
    %cst_57 = arith.constant dense<0.000000e+00> : vector<2x8x32xf32>
    %115 = vector.multi_reduction <add>, %114, %cst_57 [1] : vector<2x4x8x32xf32> to vector<2x8x32xf32>
    %116 = vector.shape_cast %115 : vector<2x8x32xf32> to vector<16x32xf32>
    %117 = vector.broadcast %5 : vector<1x32xf32> to vector<16x32xf32>
    %118 = arith.addf %116, %117 : vector<16x32xf32>
    %119 = arith.addf %70, %118 : vector<16x32xf32>
    %cst_58 = arith.constant dense<0.000000e+00> : vector<16xf32>
    %120 = vector.multi_reduction <add>, %119, %cst_58 [1] : vector<16x32xf32> to vector<16xf32>
    %121 = vector.shape_cast %120 : vector<16xf32> to vector<16x1xf32>
    %cst_59 = arith.constant 3.200000e+01 : f32
    %122 = vector.broadcast %cst_59 : f32 to vector<16x1xf32>
    %123 = arith.divf %121, %122 : vector<16x1xf32>
    %124 = vector.broadcast %123 : vector<16x1xf32> to vector<16x32xf32>
    %125 = arith.subf %119, %124 : vector<16x32xf32>
    %126 = arith.mulf %125, %125 : vector<16x32xf32>
    %cst_60 = arith.constant dense<0.000000e+00> : vector<16xf32>
    %127 = vector.multi_reduction <add>, %126, %cst_60 [1] : vector<16x32xf32> to vector<16xf32>
    %128 = vector.shape_cast %127 : vector<16xf32> to vector<16x1xf32>
    %cst_61 = arith.constant 3.200000e+01 : f32
    %129 = vector.broadcast %cst_61 : f32 to vector<16x1xf32>
    %130 = arith.divf %128, %129 : vector<16x1xf32>
    %131 = vector.broadcast %123 : vector<16x1xf32> to vector<16x32xf32>
    %132 = arith.subf %119, %131 : vector<16x32xf32>
    %cst_62 = arith.constant 9.99999974E-6 : f32
    %133 = vector.broadcast %cst_62 : f32 to vector<16x1xf32>
    %134 = arith.addf %130, %133 : vector<16x1xf32>
    %135 = math.rsqrt %134 : vector<16x1xf32>
    %136 = vector.broadcast %135 : vector<16x1xf32> to vector<16x32xf32>
    %137 = arith.mulf %132, %136 : vector<16x32xf32>
    %138 = vector.broadcast %9 : vector<1x32xf32> to vector<16x32xf32>
    %139 = arith.mulf %137, %138 : vector<16x32xf32>
    %140 = vector.broadcast %10 : vector<1x32xf32> to vector<16x32xf32>
    %141 = arith.addf %139, %140 : vector<16x32xf32>
    %c0_63 = arith.constant 0 : index
    %c0_64 = arith.constant 0 : index
    %142 = vector.load %arg8[%c0_63, %c0_64] : memref<32x64xf32, #tpu.memory_space<vmem>>, vector<32x64xf32>
    %cst_65 = arith.constant dense<0.000000e+00> : vector<16x64xf32>
    %143 = tpu.matmul %141, %142, %cst_65 {dimension_numbers = #tpu.dot_dimension_numbers<[1], [0], [0], [1], [0, 0, 1, 1], [], []>} : vector<16x32xf32>, vector<32x64xf32>, vector<16x64xf32> -> vector<16x64xf32>
    %c0_66 = arith.constant 0 : index
    %c0_67 = arith.constant 0 : index
    %144 = vector.load %arg9[%c0_66, %c0_67] : memref<1x64xf32, #tpu.memory_space<vmem>>, vector<1x64xf32>
    %145 = vector.broadcast %144 : vector<1x64xf32> to vector<16x64xf32>
    %146 = arith.addf %143, %145 : vector<16x64xf32>
    %cst_68 = arith.constant 0.000000e+00 : f32
    %147 = vector.broadcast %cst_68 : f32 to vector<16x64xf32>
    %148 = arith.maximumf %146, %147 : vector<16x64xf32>
    %c0_69 = arith.constant 0 : index
    %c0_70 = arith.constant 0 : index
    %149 = vector.load %arg10[%c0_69, %c0_70] : memref<64x32xf32, #tpu.memory_space<vmem>>, vector<64x32xf32>
    %cst_71 = arith.constant dense<0.000000e+00> : vector<16x32xf32>
    %150 = tpu.matmul %148, %149, %cst_71 {dimension_numbers = #tpu.dot_dimension_numbers<[1], [0], [0], [1], [0, 0, 1, 1], [], []>} : vector<16x64xf32>, vector<64x32xf32>, vector<16x32xf32> -> vector<16x32xf32>
    %151 = vector.broadcast %6 : vector<1x32xf32> to vector<16x32xf32>
    %152 = arith.addf %150, %151 : vector<16x32xf32>
    %153 = arith.addf %141, %152 : vector<16x32xf32>
    %cst_72 = arith.constant dense<0.000000e+00> : vector<16xf32>
    %154 = vector.multi_reduction <add>, %153, %cst_72 [1] : vector<16x32xf32> to vector<16xf32>
    %155 = vector.shape_cast %154 : vector<16xf32> to vector<16x1xf32>
    %cst_73 = arith.constant 3.200000e+01 : f32
    %156 = vector.broadcast %cst_73 : f32 to vector<16x1xf32>
    %157 = arith.divf %155, %156 : vector<16x1xf32>
    %158 = vector.broadcast %157 : vector<16x1xf32> to vector<16x32xf32>
    %159 = arith.subf %153, %158 : vector<16x32xf32>
    %160 = arith.mulf %159, %159 : vector<16x32xf32>
    %cst_74 = arith.constant dense<0.000000e+00> : vector<16xf32>
    %161 = vector.multi_reduction <add>, %160, %cst_74 [1] : vector<16x32xf32> to vector<16xf32>
    %162 = vector.shape_cast %161 : vector<16xf32> to vector<16x1xf32>
    %cst_75 = arith.constant 3.200000e+01 : f32
    %163 = vector.broadcast %cst_75 : f32 to vector<16x1xf32>
    %164 = arith.divf %162, %163 : vector<16x1xf32>
    %165 = vector.broadcast %157 : vector<16x1xf32> to vector<16x32xf32>
    %166 = arith.subf %153, %165 : vector<16x32xf32>
    %cst_76 = arith.constant 9.99999974E-6 : f32
    %167 = vector.broadcast %cst_76 : f32 to vector<16x1xf32>
    %168 = arith.addf %164, %167 : vector<16x1xf32>
    %169 = math.rsqrt %168 : vector<16x1xf32>
    %170 = vector.broadcast %169 : vector<16x1xf32> to vector<16x32xf32>
    %171 = arith.mulf %166, %170 : vector<16x32xf32>
    %172 = vector.broadcast %11 : vector<1x32xf32> to vector<16x32xf32>
    %173 = arith.mulf %171, %172 : vector<16x32xf32>
    %174 = vector.broadcast %12 : vector<1x32xf32> to vector<16x32xf32>
    %175 = arith.addf %173, %174 : vector<16x32xf32>
    %c0_77 = arith.constant 0 : index
    %c0_78 = arith.constant 0 : index
    %176 = vector.load %arg12[%c0_77, %c0_78] : memref<16x32xf32, #tpu.memory_space<vmem>>, vector<16x32xf32>
    tpu.vector_store %arg12[%c0_77, %c0_78], %175 {strides = array<i32>} : memref<16x32xf32, #tpu.memory_space<vmem>>, vector<16x32xf32>,
    return
  }
  func.func @transform_0(%arg0: i32) -> (i32, i32, i32) {
    %c0_i32 = arith.constant 0 : i32
    %c0_i32_0 = arith.constant 0 : i32
    %c0_i32_1 = arith.constant 0 : i32
    %c0_i32_2 = arith.constant 0 : i32
    return %c0_i32, %c0_i32_0, %c0_i32_1 : i32, i32, i32
  }
  func.func @transform_1(%arg0: i32) -> (i32, i32, i32) {
    %c0_i32 = arith.constant 0 : i32
    %c0_i32_0 = arith.constant 0 : i32
    %c0_i32_1 = arith.constant 0 : i32
    %c0_i32_2 = arith.constant 0 : i32
    return %c0_i32, %c0_i32_0, %c0_i32_1 : i32, i32, i32
  }
  func.func @transform_2(%arg0: i32) -> (i32, i32, i32) {
    %c0_i32 = arith.constant 0 : i32
    %c0_i32_0 = arith.constant 0 : i32
    %c0_i32_1 = arith.constant 0 : i32
    %c0_i32_2 = arith.constant 0 : i32
    return %c0_i32, %c0_i32_0, %c0_i32_1 : i32, i32, i32
  }
  func.func @transform_3(%arg0: i32) -> (i32, i32, i32) {
    %c0_i32 = arith.constant 0 : i32
    %c0_i32_0 = arith.constant 0 : i32
    %c0_i32_1 = arith.constant 0 : i32
    %c0_i32_2 = arith.constant 0 : i32
    return %c0_i32, %c0_i32_0, %c0_i32_1 : i32, i32, i32
  }
  func.func @transform_4(%arg0: i32) -> (i32, i32, i32, i32) {
    %c0_i32 = arith.constant 0 : i32
    %c0_i32_0 = arith.constant 0 : i32
    %c0_i32_1 = arith.constant 0 : i32
    %c0_i32_2 = arith.constant 0 : i32
    %c0_i32_3 = arith.constant 0 : i32
    return %c0_i32, %c0_i32_0, %c0_i32_1, %c0_i32_2 : i32, i32, i32, i32
  }
  func.func @transform_5(%arg0: i32) -> (i32, i32, i32, i32) {
    %c0_i32 = arith.constant 0 : i32
    %c0_i32_0 = arith.constant 0 : i32
    %c0_i32_1 = arith.constant 0 : i32
    %c0_i32_2 = arith.constant 0 : i32
    %c0_i32_3 = arith.constant 0 : i32
    return %c0_i32, %c0_i32_0, %c0_i32_1, %c0_i32_2 : i32, i32, i32, i32
  }
  func.func @transform_6(%arg0: i32) -> (i32, i32, i32, i32) {
    %c0_i32 = arith.constant 0 : i32
    %c0_i32_0 = arith.constant 0 : i32
    %c0_i32_1 = arith.constant 0 : i32
    %c0_i32_2 = arith.constant 0 : i32
    %c0_i32_3 = arith.constant 0 : i32
    return %c0_i32, %c0_i32_0, %c0_i32_1, %c0_i32_2 : i32, i32, i32, i32
  }
  func.func @transform_7(%arg0: i32) -> (i32, i32) {
    %c0_i32 = arith.constant 0 : i32
    %c0_i32_0 = arith.constant 0 : i32
    %c0_i32_1 = arith.constant 0 : i32
    return %c0_i32, %c0_i32_0 : i32, i32
  }
  func.func @transform_8(%arg0: i32) -> (i32, i32) {
    %c0_i32 = arith.constant 0 : i32
    %c0_i32_0 = arith.constant 0 : i32
    %c0_i32_1 = arith.constant 0 : i32
    return %c0_i32, %c0_i32_0 : i32, i32
  }
  func.func @transform_9(%arg0: i32) -> (i32, i32) {
    %c0_i32 = arith.constant 0 : i32
    %c0_i32_0 = arith.constant 0 : i32
    %c0_i32_1 = arith.constant 0 : i32
    return %c0_i32, %c0_i32_0 : i32, i32
  }
  func.func @transform_10(%arg0: i32) -> (i32, i32) {
    %c0_i32 = arith.constant 0 : i32
    %c0_i32_0 = arith.constant 0 : i32
    %c0_i32_1 = arith.constant 0 : i32
    return %c0_i32, %c0_i32_0 : i32, i32
  }
  func.func @transform_11(%arg0: i32) -> (i32, i32) {
    %c0_i32 = arith.constant 0 : i32
    %c0_i32_0 = arith.constant 0 : i32
    %c0_i32_1 = arith.constant 0 : i32
    return %c0_i32, %c0_i32_0 : i32, i32
  }
  func.func @transform_12(%arg0: i32) -> (i32, i32, i32) {
    %c0_i32 = arith.constant 0 : i32
    %c0_i32_0 = arith.constant 0 : i32
    %c0_i32_1 = arith.constant 0 : i32
    %c0_i32_2 = arith.constant 0 : i32
    return %c0_i32, %c0_i32_0, %c0_i32_1 : i32, i32, i32
  }
}

</mosaic_0001>

<bundles_post_ra>
// kernel: tpu_custom_call.1
= control target key start
LH: loop header
LB: loop body
LE: loop exit
PB: predicated region body
PF: predicated region fallthrough
CT: control target
= control target key end

     0   :  { %18 = vsyncpa [#allocation3], 0  ;;  %v7395_v2 = vmov 0.0   ;;  %vm136_vm0 = vcmask 261120   ;;  %vm7396_vm1 = vmmov 0   ;;  %s8741_s0 = inlined_call_operand.vmem [shape: f32[2,8,32], index: 0, kind: input, shape index: {}]   ;;  %s8742_s1 = inlined_call_operand.vmem [shape: f32[2,8,32], index: 1, kind: input, shape index: {}]   ;;  %s8743_s2 = inlined_call_operand.vmem [shape: f32[8,8,8], index: 2, kind: input, shape index: {}]   ;;  %s8744_s3 = inlined_call_operand.vmem [shape: f32[8,1,8], index: 3, kind: input, shape index: {}]   ;;  %s8745_s4 = inlined_call_operand.vmem [shape: f32[2,8,32,24], index: 4, kind: input, shape index: {}]   ;;  %s8746_s5 = inlined_call_operand.vmem [shape: f32[2,8,8,32], index: 5, kind: input, shape index: {}]   ;;  %s8747_s6 = inlined_call_operand.vmem [shape: f32[2,8,1,24], index: 6, kind: input, shape index: {}]   ;;  %s8748_s7 = inlined_call_operand.vmem [shape: f32[32,64], index: 7, kind: input, shape index: {}]   ;;  %s8749_s8 = inlined_call_operand.vmem [shape: f32[1,64], index: 8, kind: input, shape index: {}]   ;;  %s8750_s9 = inlined_call_operand.vmem [shape: f32[64,32], index: 9, kind: input, shape index: {}]   ;;  %s8751_s10 = inlined_call_operand.vmem [shape: f32[9,32], index: 10, kind: input, shape index: {}]   ;;  %s8752_s11 = inlined_call_operand.hbm [shape: f32[16,32], index: 11, kind: output, shape index: {0}]   ;;  %s8753_s12 = inlined_call_operand.hbm [shape: f32[8,8,8], index: 12, kind: output, shape index: {1}]  }
   0x1   :  { %v51_v0 = vld [vmem:[%s8745_s4 + $0x18] sm:$0xff]  ;;  %6732 = vmatprep.subr.mxu0 %v7395_v2  ;;  %6743 = vmatprep.subr.mxu1 %v7395_v2  ;;  %v50_v3 = vld [vmem:[%s8745_s4 + $0x10] sm:$0xff]  ;;  %v49_v5 = vld [vmem:[%s8745_s4 + $0x8] sm:$0xff] }
   0x2   :  { %v55_v1 = vld [vmem:[%s8745_s4 + $0x38] sm:$0xff]  ;;  %v54_v4 = vld [vmem:[%s8745_s4 + $0x30] sm:$0xff]  ;;  %6733 = vmatpush3.msra.mxu0 %v51_v0  ;;  %v53_v6 = vld [vmem:[%s8745_s4 + $0x28] sm:$0xff]  ;;  %6740 = vmatprep.mubr.msk.f32.mxu0 %vm7396_vm1, %v7395_v2 }
   0x3   :  { %6744 = vmatpush3.msra.mxu1 %v55_v1  ;;  %6734 = vmatprep.subr.mxu0 %v7395_v2  ;;  %v48_v7 = vld [vmem:[%s8745_s4] sm:$0xff]  ;;  %v59_v10 = vld [vmem:[%s8745_s4 + $0x58] sm:$0xff]  ;;  %v58_v12 = vld [vmem:[%s8745_s4 + $0x50] sm:$0xff] }
   0x4   :  { %6745 = vmatprep.subr.mxu1 %v7395_v2  ;;  %6735 = vmatpush3.msra.mxu0 %v50_v3  ;;  %v52_v8 = vld [vmem:[%s8745_s4 + $0x20] sm:$0xff]  ;;  %v63_v11 = vld [vmem:[%s8745_s4 + $0x78] sm:$0xff]  ;;  %v62_v13 = vld [vmem:[%s8745_s4 + $0x70] sm:$0xff] }
   0x5   :  { %6746 = vmatpush3.msra.mxu1 %v54_v4  ;;  %6736 = vmatprep.subr.mxu0 %v7395_v2  ;;  %v7501_v9 = vld [vmem:[%s8741_s0] sm:$0xff] }
   0x6   :  { %6747 = vmatprep.subr.mxu1 %v7395_v2  ;;  %6737 = vmatpush3.msra.mxu0 %v49_v5 }
   0x7   :  { %6748 = vmatpush3.msra.mxu1 %v53_v6  ;;  %6738 = vmatprep.subr.mxu0 %v7395_v2 }
   0x8   :  { %6749 = vmatprep.subr.mxu1 %v7395_v2  ;;  %6739 = vmatpush3.msra.mxu0 %v48_v7 }
   0x9   :  { %6750 = vmatpush3.msra.mxu1 %v52_v8  ;;  %6741 = vmatmul.mubr.msk.f32.vlgmr.msra.gmra.mxu0 %vm136_vm0, %v7501_v9 }
   0xa   :  { %6751 = vmatprep.mubr.msk.f32.mxu1 %vm7396_vm1, %v7395_v2  ;;  %6754 = vmatprep.subr.mxu0 %v7395_v2 }
   0xb   :  { %6765 = vmatprep.subr.mxu1 %v7395_v2  ;;  %6752 = vmatmul.mubr.msk.f32.vlgmr.msra.gmra.mxu1 %vm136_vm0, %v7501_v9 }
   0xc   :  { %19 = vsyncpa [#allocation5], 0  ;;  %6755 = vmatpush3.msra.mxu0 %v59_v10  ;;  %6766 = vmatpush3.msra.mxu1 %v63_v11  ;;  %v57_v14 = vld [vmem:[%s8745_s4 + $0x48] sm:$0xff]  ;;  %v56_v16 = vld [vmem:[%s8745_s4 + $0x40] sm:$0xff]  ;;  %s7397_s20 = smov 120   ;;  %s7398_s14 = smov 112  }
   0xd   :  { %6756 = vmatprep.subr.mxu0 %v7395_v2  ;;  %6767 = vmatprep.subr.mxu1 %v7395_v2  ;;  %v61_v15 = vld [vmem:[%s8745_s4 + $0x68] sm:$0xff]  ;;  %v60_v17 = vld [vmem:[%s8745_s4 + $0x60] sm:$0xff]  ;;  %v67_v18 = vld [vmem:[%s8745_s4 + $0x98] sm:$0xff]  ;;  %vm722_vm2 = vcmask 64512   ;;  %vm6178_vm3 = vcmask 523264  }
   0xe   :  { %6757 = vmatpush3.msra.mxu0 %v58_v12  ;;  %6768 = vmatpush3.msra.mxu1 %v62_v13  ;;  %v71_v19 = vld [vmem:[%s8745_s4 + $0xb8] sm:$0xff]  ;;  %v66_v20 = vld [vmem:[%s8745_s4 + $0x90] sm:$0xff]  ;;  %v65_v22 = vld [vmem:[%s8745_s4 + $0x88] sm:$0xff] }
   0xf   :  { %6758 = vmatprep.subr.mxu0 %v7395_v2  ;;  %6769 = vmatprep.subr.mxu1 %v7395_v2  ;;  %v70_v21 = vld [vmem:[%s8745_s4 + $0xb0] sm:$0xff]  ;;  %v69_v23 = vld [vmem:[%s8745_s4 + $0xa8] sm:$0xff]  ;;  %v64_v24 = vld [vmem:[%s8745_s4 + $0x80] sm:$0xff] }
  0x10   :  { %6759 = vmatpush3.msra.mxu0 %v57_v14  ;;  %6770 = vmatpush3.msra.mxu1 %v61_v15  ;;  %v68_v25 = vld [vmem:[%s8745_s4 + $0xa0] sm:$0xff]  ;;  %v7588_v26 = vld [vmem:[%s8741_s0 + $0x8] sm:$0xff]  ;;  %v75_v27 = vld [vmem:[%s8745_s4 + $0xd8] sm:$0xff] }
  0x11   :  { %6760 = vmatprep.subr.mxu0 %v7395_v2  ;;  %6771 = vmatprep.subr.mxu1 %v7395_v2  ;;  %v79_v28 = vld [vmem:[%s8745_s4 + $0xf8] sm:$0xff]  ;;  %v74_v29 = vld [vmem:[%s8745_s4 + $0xd0] sm:$0xff]  ;;  %v73_v31 = vld [vmem:[%s8745_s4 + $0xc8] sm:$0xff] }
  0x12   :  { %6761 = vmatpush3.msra.mxu0 %v56_v16  ;;  %6762 = vmatprep.mubr.msk.f32.mxu0 %vm7396_vm1, %v7395_v2  ;;  %v78_v30 = vld [vmem:[%s8745_s4 + $0xf0] sm:$0xff]  ;;  %v77_v32 = vld [vmem:[%s8745_s4 + $0xe8] sm:$0xff]  ;;  %v72_v33 = vld [vmem:[%s8745_s4 + $0xc0] sm:$0xff] }
  0x13   :  { %6772 = vmatpush3.msra.mxu1 %v60_v17  ;;  %6763 = vmatmul.mubr.msk.f32.vlgmr.msra.gmra.mxu0 %vm136_vm0, %v7501_v9  ;;  %v76_v34 = vld [vmem:[%s8745_s4 + $0xe0] sm:$0xff] }
  0x14   :  { %6773 = vmatprep.mubr.msk.f32.mxu1 %vm7396_vm1, %v7395_v2  ;;  %6776 = vmatprep.subr.mxu0 %v7395_v2  ;;  %v6334_v35 = vld [vmem:[%s8747_s6] ss:$0 sm:$0xff]  ;;  %v6335_v37 = vld [vmem:[%s8747_s6 + $0x1] ss:$0 sm:$0xff]  ;;  %v6336_v43 = vld [vmem:[%s8747_s6 + $0x2] ss:$0 sm:$0xff] }
  0x15   :  { %6787 = vmatprep.subr.mxu1 %v7395_v2  ;;  %6774 = vmatmul.mubr.msk.f32.vlgmr.msra.gmra.mxu1 %vm136_vm0, %v7501_v9  ;;  %v6337_v45 = vld [vmem:[%s8747_s6 + $0x3] ss:$0 sm:$0xff]  ;;  %v6338_v51 = vld [vmem:[%s8747_s6 + $0x4] ss:$0 sm:$0xff]  ;;  %v6339_v52 = vld [vmem:[%s8747_s6 + $0x5] ss:$0 sm:$0xff] }
  0x16   :  { %6777 = vmatpush3.msra.mxu0 %v67_v18  ;;  %6788 = vmatpush3.msra.mxu1 %v71_v19  ;;  %v6340_v59 = vld [vmem:[%s8747_s6 + $0x6] ss:$0 sm:$0xff]  ;;  %v6341_v60 = vld [vmem:[%s8747_s6 + $0x7] ss:$0 sm:$0xff]  ;;  %v704_v18 = vld [vmem:[%s8743_s2 + $0x8] sm:$0xff] }
  0x17   :  { %6778 = vmatprep.subr.mxu0 %v7395_v2  ;;  %6789 = vmatprep.subr.mxu1 %v7395_v2  ;;  %v703_v14 = vld [vmem:[%s8743_s2] sm:$0xff] }
  0x18   :  { %6779 = vmatpush3.msra.mxu0 %v66_v20  ;;  %6790 = vmatpush3.msra.mxu1 %v70_v21 }
  0x19   :  { %6780 = vmatprep.subr.mxu0 %v7395_v2  ;;  %6791 = vmatprep.subr.mxu1 %v7395_v2 }
  0x1a   :  { %6781 = vmatpush3.msra.mxu0 %v65_v22  ;;  %6792 = vmatpush3.msra.mxu1 %v69_v23 }
  0x1b   :  { %6782 = vmatprep.subr.mxu0 %v7395_v2  ;;  %6793 = vmatprep.subr.mxu1 %v7395_v2 }
  0x1c   :  { %6783 = vmatpush3.msra.mxu0 %v64_v24  ;;  %6784 = vmatprep.mubr.msk.f32.mxu0 %vm7396_vm1, %v7395_v2  ;;  %v705_v24 = vld [vmem:[%s8743_s2 + $0x10] sm:$0xff] }
  0x1d   :  { %6794 = vmatpush3.msra.mxu1 %v68_v25  ;;  %6795 = vmatprep.mubr.msk.f32.mxu1 %vm7396_vm1, %v7395_v2 }
  0x1e   :  { %6785 = vmatmul.mubr.msk.f32.vlgmr.msra.gmra.mxu0 %vm136_vm0, %v7588_v26  ;;  %6796 = vmatmul.mubr.msk.f32.vlgmr.msra.gmra.mxu1 %vm136_vm0, %v7588_v26 }
  0x1f   :  { %6798 = vmatprep.subr.mxu0 %v7395_v2  ;;  %6809 = vmatprep.subr.mxu1 %v7395_v2 }
  0x20   :  { %6799 = vmatpush3.msra.mxu0 %v75_v27  ;;  %6810 = vmatpush3.msra.mxu1 %v79_v28 }
  0x21   :  { %6800 = vmatprep.subr.mxu0 %v7395_v2  ;;  %6811 = vmatprep.subr.mxu1 %v7395_v2 }
  0x22   :  { %6801 = vmatpush3.msra.mxu0 %v74_v29  ;;  %6812 = vmatpush3.msra.mxu1 %v78_v30  ;;  %v706_v29 = vld [vmem:[%s8743_s2 + $0x18] sm:$0xff] }
  0x23   :  { %6802 = vmatprep.subr.mxu0 %v7395_v2  ;;  %6813 = vmatprep.subr.mxu1 %v7395_v2 }
  0x24   :  { %6803 = vmatpush3.msra.mxu0 %v73_v31  ;;  %6814 = vmatpush3.msra.mxu1 %v77_v32 }
  0x25   :  { %6804 = vmatprep.subr.mxu0 %v7395_v2  ;;  %6815 = vmatprep.subr.mxu1 %v7395_v2 }
  0x26   :  { %6805 = vmatpush3.msra.mxu0 %v72_v33  ;;  %6806 = vmatprep.mubr.msk.f32.mxu0 %vm7396_vm1, %v7395_v2 }
  0x27   :  { %6816 = vmatpush3.msra.mxu1 %v76_v34  ;;  %6817 = vmatprep.mubr.msk.f32.mxu1 %vm7396_vm1, %v7395_v2 }
  0x28   :  { %6807 = vmatmul.mubr.msk.f32.vlgmr.msra.gmra.mxu0 %vm136_vm0, %v7588_v26  ;;  %6818 = vmatmul.mubr.msk.f32.vlgmr.msra.gmra.mxu1 %vm136_vm0, %v7588_v26 }
  0x29   :  { %6820 = vmatprep.subr.mxu0 %v7395_v2  ;;  %6822 = vmatprep.mubr.msk.f32.mxu0 %vm7396_vm1, %v7395_v2 }
  0x2a   :  { %6835 = vmatprep.subr.mxu1 %v7395_v2  ;;  %6837 = vmatprep.mubr.msk.f32.mxu1 %vm7396_vm1, %v7395_v2 }
  0xc9   :  { %v206_v36 = vpop.f32.mrf.mxu0 }
  0xca   :  { %v207_v38 = vadd.f32 %v6334_v35, %v206_v36  ;;  %v708_v35 = vld [vmem:[%s8743_s2 + $0x28] sm:$0xff]  ;;  %v707_v36 = vld [vmem:[%s8743_s2 + $0x20] sm:$0xff] }
  0xcb   :  { %v6742_v39 = vpop.f32.mrf.mxu0  ;;  %v276_v40 = vpop.f32.mrf.mxu1 }
  0xcc   :  { %v7650_v41 = vadd.f32 %v6335_v37, %v276_v40  ;;  %720 = vrot.lane.b32.xlu0 %v207_v38, %s7397_s20 }
  0xcd   :  { %v6753_v42 = vpop.f32.mrf.mxu1 }
  0xd0   :  { %798 = vrot.lane.b32.xlu0 %v7650_v41, %s7397_s20 }
  0xd3   :  { %v346_v44 = vpop.f32.mrf.mxu0 }
  0xd4   :  { %v7661_v46 = vadd.f32 %v6336_v43, %v346_v44 }
  0xd5   :  { %v6764_v47 = vpop.f32.mrf.mxu0  ;;  %v416_v48 = vpop.f32.mrf.mxu1 }
  0xd6   :  { %v7663_v49 = vadd.f32 %v6337_v45, %v416_v48  ;;  %875 = vrot.lane.b32.xlu1 %v7661_v46, %s7397_s20  ;;  %v709_v47 = vld [vmem:[%s8743_s2 + $0x30] sm:$0xff]  ;;  %v710_v48 = vld [vmem:[%s8743_s2 + $0x38] sm:$0xff] }
  0xd7   :  { %v6775_v50 = vpop.f32.mrf.mxu1 }
  0xda   :  { %952 = vrot.lane.b32.xlu1 %v7663_v49, %s7397_s20 }
  0xde   :  { %v489_v53 = vpop.f32.mrf.mxu0  ;;  %v559_v54 = vpop.f32.mrf.mxu1 }
  0xdf   :  { %v7675_v55 = vadd.f32 %v6338_v51, %v489_v53  ;;  %v7677_v56 = vadd.f32 %v6339_v52, %v559_v54 }
  0xe0   :  { %v6786_v57 = vpop.f32.mrf.mxu0  ;;  %v6797_v58 = vpop.f32.mrf.mxu1 }
  0xe1   :  { %1106 = vrot.lane.b32.xlu1 %v7677_v56, %s7397_s20  ;;  %1029 = vrot.lane.b32.xlu0 %v7675_v55, %s7397_s20 }
  0xe8   :  { %v629_v61 = vpop.f32.mrf.mxu0  ;;  %v699_v62 = vpop.f32.mrf.mxu1 }
  0xe9   :  { %v7689_v63 = vadd.f32 %v6340_v59, %v629_v61  ;;  %v7691_v0 = vadd.f32 %v6341_v60, %v699_v62 }
  0xea   :  { %v6808_v1 = vpop.f32.mrf.mxu0  ;;  %v6819_v3 = vpop.f32.mrf.mxu1 }
  0xeb   :  { %1260 = vrot.lane.b32.xlu1 %v7691_v0, %s7397_s20  ;;  %1183 = vrot.lane.b32.xlu0 %v7689_v63, %s7397_s20 }
  0xef   :  { %1424 = vrot.lane.b32.xlu1 %v207_v38, %s7398_s14 }
 0x13e   :  { %v721_v4 = vpop.permute.xlu0 %720 }
 0x13f   :  { %6821 = vmatpush3.xpose.msk.msra.mxu0 %vm722_vm2, %v721_v4 }
 0x140   :  { %6825 = vmatprep.subr.mxu0 %v7395_v2 }
 0x142   :  { %6823 = vmatmul.mubr.msk.f32.vlgmr.msra.gmra.mxu0 %vm722_vm2, %v207_v38  ;;  %v799_v5 = vpop.permute.xlu0 %798 }
 0x143   :  { %6826 = vmatpush3.xpose.msk.msra.mxu0 %vm722_vm2, %v799_v5  ;;  %6827 = vmatprep.mubr.msk.f32.mxu0 %vm7396_vm1, %v7395_v2 }
 0x144   :  { %6830 = vmatprep.subr.mxu0 %v7395_v2 }
 0x146   :  { %6828 = vmatmul.mubr.msk.f32.vlgmr.msra.gmra.mxu0 %vm722_vm2, %v7650_v41 }
 0x147   :  { %6832 = vmatprep.mubr.msk.f32.mxu0 %vm7396_vm1, %v7395_v2 }
 0x148   :  { %v876_v6 = vpop.permute.xlu1 %875 }
 0x149   :  { %6831 = vmatpush3.xpose.msk.msra.mxu0 %vm722_vm2, %v876_v6 }
 0x14a   :  { %6840 = vmatprep.subr.mxu0 %v7395_v2 }
 0x14c   :  { %6833 = vmatmul.mubr.msk.f32.vlgmr.msra.gmra.mxu0 %vm722_vm2, %v7661_v46  ;;  %v953_v7 = vpop.permute.xlu1 %952 }
 0x14d   :  { %6836 = vmatpush3.xpose.msk.msra.mxu1 %vm722_vm2, %v953_v7  ;;  %6842 = vmatprep.mubr.msk.f32.mxu0 %vm7396_vm1, %v7395_v2 }
 0x14e   :  { %6845 = vmatprep.subr.mxu1 %v7395_v2 }
 0x150   :  { %6838 = vmatmul.mubr.msk.f32.vlgmr.msra.gmra.mxu1 %vm722_vm2, %v7663_v49 }
 0x151   :  { %6847 = vmatprep.mubr.msk.f32.mxu1 %vm7396_vm1, %v7395_v2 }
 0x153   :  { %v1107_v8 = vpop.permute.xlu1 %1106  ;;  %v1030_v10 = vpop.permute.xlu0 %1029 }
 0x154   :  { %6841 = vmatpush3.xpose.msk.msra.mxu0 %vm722_vm2, %v1030_v10  ;;  %6846 = vmatpush3.xpose.msk.msra.mxu1 %vm722_vm2, %v1107_v8 }
 0x155   :  { %6855 = vmatprep.subr.mxu1 %v7395_v2  ;;  %6850 = vmatprep.subr.mxu0 %v7395_v2 }
 0x157   :  { %6843 = vmatmul.mubr.msk.f32.vlgmr.msra.gmra.mxu0 %vm722_vm2, %v7675_v55  ;;  %6848 = vmatmul.mubr.msk.f32.vlgmr.msra.gmra.mxu1 %vm722_vm2, %v7677_v56 }
 0x158   :  { %6852 = vmatprep.mubr.msk.f32.mxu0 %vm7396_vm1, %v7395_v2  ;;  %6857 = vmatprep.mubr.msk.f32.mxu1 %vm7396_vm1, %v7395_v2 }
 0x15d   :  { %v1261_v11 = vpop.permute.xlu1 %1260  ;;  %v1184_v12 = vpop.permute.xlu0 %1183 }
 0x15e   :  { %6851 = vmatpush3.xpose.msk.msra.mxu0 %vm722_vm2, %v1184_v12  ;;  %6856 = vmatpush3.xpose.msk.msra.mxu1 %vm722_vm2, %v1261_v11 }
 0x15f   :  { %6860 = vmatprep.subr.mxu0 %v7395_v2  ;;  %6865 = vmatprep.subr.mxu1 %v7395_v2 }
 0x161   :  { %6858 = vmatmul.mubr.msk.f32.vlgmr.msra.gmra.mxu1 %vm722_vm2, %v7691_v0  ;;  %v1425_v13 = vpop.permute.xlu1 %1424  ;;  %6853 = vmatmul.mubr.msk.f32.vlgmr.msra.gmra.mxu0 %vm722_vm2, %v7689_v63 }
 0x162   :  { %6861 = vmatpush3.msra.mxu0 %v1425_v13  ;;  %6862 = vmatprep.mubr.msk.f32.mxu0 %vm7396_vm1, %v7395_v2 }
 0x163   :  { %6870 = vmatprep.subr.mxu0 %v7395_v2  ;;  %6867 = vmatprep.mubr.msk.f32.mxu1 %vm7396_vm1, %v7395_v2 }
 0x202   :  { %v793_v15 = vpop.f32.mrf.mxu0 }
 0x203   :  { %v794_v16 = vadd.f32 %v793_v15, %v703_v14 }
 0x204   :  { %v6824_v17 = vpop.f32.mrf.mxu0 }
 0x205   :  { %v1336_v19 = vsel %vm722_vm2, %v794_v16, -inf }
 0x206   :  { %1337 = vmax.xlane.f32.xlu0 %v1336_v19  ;;  %v870_v20 = vpop.f32.mrf.mxu0 }
 0x207   :  { %v871_v21 = vadd.f32 %v870_v20, %v704_v18 }
 0x208   :  { %v6829_v22 = vpop.f32.mrf.mxu0 }
 0x209   :  { %v1339_v23 = vsel %vm722_vm2, %v871_v21, -inf }
 0x20a   :  { %1340 = vmax.xlane.f32.xlu1 %v1339_v23 }
 0x20c   :  { %v947_v25 = vpop.f32.mrf.mxu0 }
 0x20d   :  { %v948_v27 = vadd.f32 %v947_v25, %v705_v24 }
 0x20e   :  { %v6834_v28 = vpop.f32.mrf.mxu0 }
 0x20f   :  { %v1342_v30 = vsel %vm722_vm2, %v948_v27, -inf }
 0x210   :  { %v1024_v31 = vpop.f32.mrf.mxu1  ;;  %1343 = vmax.xlane.f32.xlu0 %v1342_v30 }
 0x211   :  { %v1025_v32 = vadd.f32 %v1024_v31, %v706_v29 }
 0x212   :  { %v6839_v33 = vpop.f32.mrf.mxu1 }
 0x213   :  { %v1345_v34 = vsel %vm722_vm2, %v1025_v32, -inf }
 0x214   :  { %1346 = vmax.xlane.f32.xlu0 %v1345_v34 }
 0x217   :  { %v1178_v37 = vpop.f32.mrf.mxu1  ;;  %v1101_v38 = vpop.f32.mrf.mxu0 }
 0x218   :  { %v7768_v39 = vadd.f32 %v1178_v37, %v708_v35  ;;  %v1102_v40 = vadd.f32 %v1101_v38, %v707_v36 }
 0x219   :  { %v6844_v42 = vpop.f32.mrf.mxu0  ;;  %v6849_v43 = vpop.f32.mrf.mxu1 }
 0x21a   :  { %v1351_v44 = vsel %vm722_vm2, %v7768_v39, -inf  ;;  %v1348_v45 = vsel %vm722_vm2, %v1102_v40, -inf }
 0x21b   :  { %1352 = vmax.xlane.f32.xlu0 %v1351_v44  ;;  %1349 = vmax.xlane.f32.xlu1 %v1348_v45 }
 0x221   :  { %v1255_v50 = vpop.f32.mrf.mxu0  ;;  %v1332_v51 = vpop.f32.mrf.mxu1 }
 0x222   :  { %v1256_v52 = vadd.f32 %v1255_v50, %v709_v47  ;;  %v1333_v53 = vadd.f32 %v1332_v51, %v710_v48 }
 0x223   :  { %v6854_v54 = vpop.f32.mrf.mxu0  ;;  %v6859_v57 = vpop.f32.mrf.mxu1 }
 0x224   :  { %v1357_v58 = vsel %vm722_vm2, %v1333_v53, -inf  ;;  %v1354_v59 = vsel %vm722_vm2, %v1256_v52, -inf }
 0x225   :  { %1358 = vmax.xlane.f32.xlu0 %v1357_v58  ;;  %1355 = vmax.xlane.f32.xlu1 %v1354_v59 }
 0x236   :  { %1576 = vrot.lane.b32.xlu1 %v7661_v46, %s7398_s14 }
 0x23a   :  { %1652 = vrot.lane.b32.xlu1 %v7663_v49, %s7398_s14 }
 0x23b   :  { %1500 = vrot.lane.b32.xlu0 %v7650_v41, %s7398_s14 }
 0x28f   :  { %v1338_v60 = vpop.xlane.xlu0 %1337 }
 0x290   :  { %v1360_v61 = vsub.f32 %v794_v16, %v1338_v60 }
 0x292   :  { %v1368_v62 = vmul.f32 1.442695, %v1360_v61 }
 0x293   :  { %v1341_v1 = vpop.xlane.xlu1 %1340 }
 0x294   :  { %7274 = vpow2.f32 %v1368_v62  ;;  %v1361_v3 = vsub.f32 %v871_v21, %v1341_v1 }
 0x296   :  { %v1370_v4 = vmul.f32 1.442695, %v1361_v3 }
 0x298   :  { %7276 = vpow2.f32 %v1370_v4 }
 0x299   :  { %v1344_v5 = vpop.xlane.xlu0 %1343 }
 0x29a   :  { %v1362_v6 = vsub.f32 %v948_v27, %v1344_v5 }
 0x29c   :  { %v1372_v7 = vmul.f32 1.442695, %v1362_v6  ;;  %v711_v6 = vld [vmem:[%s8746_s5] sm:$0xff] }
 0x29d   :  { %v1347_v8 = vpop.xlane.xlu0 %1346 }
 0x29e   :  { %7278 = vpow2.f32 %v1372_v7  ;;  %v1363_v46 = vsub.f32 %v1025_v32, %v1347_v8 }
 0x2a0   :  { %v1374_v10 = vmul.f32 1.442695, %v1363_v46 }
 0x2a1   :  { %v7275_v11 = vpop.eup %7274 }
 0x2a2   :  { %7280 = vpow2.f32 %v1374_v10  ;;  %v1384_v49 = vsel %vm722_vm2, %v7275_v11, 0.0  ;;  %v712_v10 = vld [vmem:[%s8746_s5 + $0x8] sm:$0xff] }
 0x2a3   :  { %1385 = vadd.xlane.f32.xlu1 %v1384_v49 }
 0x2a4   :  { %v1353_v13 = vpop.xlane.xlu0 %1352  ;;  %v1350_v20 = vpop.xlane.xlu1 %1349 }
 0x2a5   :  { %v7277_v41 = vpop.eup %7276  ;;  %v1364_v21 = vsub.f32 %v1102_v40, %v1350_v20  ;;  %v1365_v23 = vsub.f32 %v7768_v39, %v1353_v13 }
 0x2a6   :  { %v1387_v12 = vsel %vm722_vm2, %v7277_v41, 0.0 }
 0x2a7   :  { %1388 = vadd.xlane.f32.xlu0 %v1387_v12  ;;  %v1376_v24 = vmul.f32 1.442695, %v1364_v21  ;;  %v1378_v27 = vmul.f32 1.442695, %v1365_v23  ;;  %v714_v12 = vld [vmem:[%s8746_s5 + $0x18] sm:$0xff]  ;;  %v717_v21 = vld [vmem:[%s8746_s5 + $0x30] sm:$0xff] }
 0x2a9   :  { %7282 = vpow2.f32 %v1376_v24  ;;  %v718_v24 = vld [vmem:[%s8746_s5 + $0x38] sm:$0xff] }
 0x2aa   :  { %7284 = vpow2.f32 %v1378_v27 }
 0x2ab   :  { %v7789_v14 = vpop.eup %7278 }
 0x2ac   :  { %v1390_v15 = vsel %vm722_vm2, %v7789_v14, 0.0 }
 0x2ad   :  { %1391 = vadd.xlane.f32.xlu1 %v1390_v15  ;;  %v715_v15 = vld [vmem:[%s8746_s5 + $0x20] sm:$0xff] }
 0x2ae   :  { %v1359_v16 = vpop.xlane.xlu0 %1358  ;;  %v1356_v22 = vpop.xlane.xlu1 %1355 }
 0x2af   :  { %v7793_v17 = vpop.eup %7280  ;;  %v1366_v25 = vsub.f32 %v1256_v52, %v1356_v22  ;;  %v1367_v28 = vsub.f32 %v1333_v53, %v1359_v16 }
 0x2b0   :  { %v1393_v18 = vsel %vm722_vm2, %v7793_v17, 0.0 }
 0x2b1   :  { %1394 = vadd.xlane.f32.xlu0 %v1393_v18  ;;  %v1380_v29 = vmul.f32 1.442695, %v1366_v25  ;;  %v1382_v30 = vmul.f32 1.442695, %v1367_v28  ;;  %v716_v18 = vld [vmem:[%s8746_s5 + $0x28] sm:$0xff] }
 0x2b2   :  { %v1501_v19 = vpop.permute.xlu0 %1500  ;;  %v1577_v37 = vpop.permute.xlu1 %1576 }
 0x2b3   :  { %6866 = vmatpush3.msra.mxu1 %v1501_v19  ;;  %7286 = vpow2.f32 %v1380_v29 }
 0x2b4   :  { %6875 = vmatprep.subr.mxu1 %v7395_v2  ;;  %7288 = vpow2.f32 %v1382_v30 }
 0x2b6   :  { %v7283_v31 = vpop.eup %7282  ;;  %v1653_v38 = vpop.permute.xlu1 %1652 }
 0x2b7   :  { %v1396_v32 = vsel %vm722_vm2, %v7283_v31, 0.0 }
 0x2be   :  { %1804 = vrot.lane.b32.xlu1 %v7677_v56, %s7398_s14  ;;  %v7803_v56 = vpop.eup %7284 }
 0x2bf   :  { %v1399_v33 = vsel %vm722_vm2, %v7803_v56, 0.0 }
 0x2c7   :  { %1728 = vrot.lane.b32.xlu0 %v7675_v55, %s7398_s14  ;;  %v7806_v55 = vpop.eup %7286 }
 0x2c8   :  { %v1402_v34 = vsel %vm722_vm2, %v7806_v55, 0.0  ;;  %v7812_v35 = vpop.eup %7288 }
 0x2c9   :  { %v1405_v36 = vsel %vm722_vm2, %v7812_v35, 0.0 }
 0x2e2   :  { %1397 = vadd.xlane.f32.xlu1 %v1396_v32 }
 0x2e6   :  { %1400 = vadd.xlane.f32.xlu0 %v1399_v33  ;;  %1403 = vadd.xlane.f32.xlu1 %v1402_v34 }
 0x2ea   :  { %1406 = vadd.xlane.f32.xlu0 %v1405_v36 }
 0x2f7   :  { %1956 = vrot.lane.b32.xlu1 %v7691_v0, %s7398_s14 }
 0x300   :  { %1880 = vrot.lane.b32.xlu0 %v7689_v63, %s7398_s14 }
 0x32c   :  { %v1386_v39 = vpop.xlane.xlu1 %1385 }
 0x32d   :  { %7290 = vrcp.f32 %v1386_v39 }
 0x330   :  { %v1389_v40 = vpop.xlane.xlu0 %1388 }
 0x331   :  { %7292 = vrcp.f32 %v1389_v40 }
 0x336   :  { %v1392_v42 = vpop.xlane.xlu1 %1391 }
 0x337   :  { %7294 = vrcp.f32 %v1392_v42  ;;  %v7920_v42 = vld [vmem:[%s8751_s10] sm:$0xff] }
 0x33a   :  { %v7291_v43 = vpop.eup %7290  ;;  %v1395_v44 = vpop.xlane.xlu0 %1394 }
 0x33b   :  { %7296 = vrcp.f32 %v1395_v44  ;;  %v1409_v45 = vmul.f32 %v7291_v43, %v7275_v11  ;;  %v1805_v53 = vpop.permute.xlu1 %1804  ;;  %v713_v11 = vld [vmem:[%s8746_s5 + $0x10] sm:$0xff] }
 0x33d   :  { %6863 = vmatmul.mubr.msk.f32.vlgmr.msra.gmra.mxu0 %vm722_vm2, %v1409_v45 }
 0x33e   :  { %v7293_v47 = vpop.eup %7292  ;;  %6871 = vmatpush3.msra.mxu0 %v1577_v37  ;;  %6872 = vmatprep.mubr.msk.f32.mxu0 %vm7396_vm1, %v7395_v2  ;;  %v1729_v50 = vpop.permute.xlu0 %1728 }
 0x33f   :  { %v1411_v63 = vmul.f32 %v7293_v47, %v7277_v41  ;;  %6880 = vmatprep.subr.mxu0 %v7395_v2 }
 0x341   :  { %6868 = vmatmul.mubr.msk.f32.vlgmr.msra.gmra.mxu1 %vm722_vm2, %v1411_v63 }
 0x342   :  { %6876 = vmatpush3.msra.mxu1 %v1653_v38  ;;  %6877 = vmatprep.mubr.msk.f32.mxu1 %vm7396_vm1, %v7395_v2 }
 0x343   :  { %6885 = vmatprep.subr.mxu1 %v7395_v2 }
 0x344   :  { %v7295_v0 = vpop.eup %7294 }
 0x345   :  { %v1413_v48 = vmul.f32 %v7295_v0, %v7789_v14 }
 0x347   :  { %6873 = vmatmul.mubr.msk.f32.vlgmr.msra.gmra.mxu0 %vm722_vm2, %v1413_v48 }
 0x348   :  { %v7297_v51 = vpop.eup %7296  ;;  %6881 = vmatpush3.msra.mxu0 %v1729_v50  ;;  %6882 = vmatprep.mubr.msk.f32.mxu0 %vm7396_vm1, %v7395_v2 }
 0x349   :  { %v1415_v52 = vmul.f32 %v7297_v51, %v7793_v17  ;;  %6890 = vmatprep.subr.mxu0 %v7395_v2 }
 0x34b   :  { %6878 = vmatmul.mubr.msk.f32.vlgmr.msra.gmra.mxu1 %vm722_vm2, %v1415_v52 }
 0x34c   :  { %6886 = vmatpush3.msra.mxu1 %v1805_v53  ;;  %6887 = vmatprep.mubr.msk.f32.mxu1 %vm7396_vm1, %v7395_v2 }
 0x34d   :  { %6895 = vmatprep.subr.mxu1 %v7395_v2 }
 0x36b   :  { %v1398_v54 = vpop.xlane.xlu1 %1397 }
 0x36c   :  { %7298 = vrcp.f32 %v1398_v54  ;;  %v6384_v54 = vld [vmem:[%s8745_s4 + $0x110] sm:$0xff] }
 0x36f   :  { %v1401_v57 = vpop.xlane.xlu0 %1400  ;;  %v1404_v58 = vpop.xlane.xlu1 %1403 }
 0x370   :  { %7300 = vrcp.f32 %v1401_v57  ;;  %v6388_v57 = vld [vmem:[%s8745_s4 + $0x130] sm:$0xff] }
 0x371   :  { %7302 = vrcp.f32 %v1404_v58 }
 0x373   :  { %v1407_v59 = vpop.xlane.xlu0 %1406  ;;  %v1957_v7 = vpop.permute.xlu1 %1956 }
 0x374   :  { %7304 = vrcp.f32 %v1407_v59 }
 0x377   :  { %v1881_v62 = vpop.permute.xlu0 %1880 }
 0x379   :  { %v7299_v60 = vpop.eup %7298 }
 0x37a   :  { %v1417_v61 = vmul.f32 %v7299_v60, %v7283_v31 }
 0x37c   :  { %6883 = vmatmul.mubr.msk.f32.vlgmr.msra.gmra.mxu0 %vm722_vm2, %v1417_v61 }
 0x37d   :  { %v7301_v1 = vpop.eup %7300  ;;  %6891 = vmatpush3.msra.mxu0 %v1881_v62  ;;  %6892 = vmatprep.mubr.msk.f32.mxu0 %vm7396_vm1, %v7395_v2 }
 0x37e   :  { %v7303_v3 = vpop.eup %7302  ;;  %v1419_v4 = vmul.f32 %v7301_v1, %v7803_v56  ;;  %6900 = vmatprep.subr.mxu0 %v7395_v2 }
 0x37f   :  { %v1421_v5 = vmul.f32 %v7303_v3, %v7806_v55  ;;  %v2630_v55 = vlaneseq }
 0x380   :  { %6888 = vmatmul.mubr.msk.f32.vlgmr.msra.gmra.mxu1 %vm722_vm2, %v1419_v4 }
 0x381   :  { %v7305_v8 = vpop.eup %7304  ;;  %6893 = vmatmul.mubr.msk.f32.vlgmr.msra.gmra.mxu0 %vm722_vm2, %v1421_v5  ;;  %6896 = vmatpush3.msra.mxu1 %v1957_v7 }
 0x382   :  { %6897 = vmatprep.mubr.msk.f32.mxu1 %vm7396_vm1, %v7395_v2  ;;  %v1423_v46 = vmul.f32 %v7305_v8, %v7812_v35  ;;  %6901 = vmatpush3.msra.mxu0 %v711_v6  ;;  %v7911_v35 = vshrl.u32 %v2630_v55, 7  ;;  %v8063_v55 = vld [vmem:[%s8745_s4 + $0x1e0] sm:$0xff] }
 0x383   :  { %6902 = vmatprep.mubr.msk.f32.mxu0 %vm7396_vm1, %v7395_v2  ;;  %6905 = vmatprep.subr.mxu1 %v7395_v2 }
 0x384   :  { %6898 = vmatmul.mubr.msk.f32.vlgmr.msra.gmra.mxu1 %vm722_vm2, %v1423_v46  ;;  %6910 = vmatprep.subr.mxu0 %v7395_v2  ;;  %v2632_v38 = vsub.s32 0, %v7911_v35 }
 0x385   :  { %6906 = vmatpush3.msra.mxu1 %v712_v10  ;;  %6907 = vmatprep.mubr.msk.f32.mxu1 %vm7396_vm1, %v7395_v2 }
 0x386   :  { %6915 = vmatprep.subr.mxu1 %v7395_v2  ;;  %v2633_v63 = vrot.slane %v7920_v42, %v2632_v38 }
 0x3fd   :  { %v1496_v49 = vpop.f32.mrf.mxu0 }
 0x3fe   :  { %6903 = vmatmul.mubr.msk.f32.vlgmr.msra.gmra.mxu0 %vm722_vm2, %v1496_v49 }
 0x3ff   :  { %v6864_v41 = vpop.f32.mrf.mxu0  ;;  %6911 = vmatpush3.msra.mxu0 %v713_v11  ;;  %6912 = vmatprep.mubr.msk.f32.mxu0 %vm7396_vm1, %v7395_v2 }
 0x400   :  { %6920 = vmatprep.subr.mxu0 %v7395_v2 }
 0x401   :  { %v1572_v13 = vpop.f32.mrf.mxu1 }
 0x402   :  { %6908 = vmatmul.mubr.msk.f32.vlgmr.msra.gmra.mxu1 %vm722_vm2, %v1572_v13  ;;  %v6389_v13 = vld [vmem:[%s8745_s4 + $0x138] sm:$0xff] }
 0x403   :  { %v6869_v14 = vpop.f32.mrf.mxu1  ;;  %6916 = vmatpush3.msra.mxu1 %v714_v12  ;;  %6917 = vmatprep.mubr.msk.f32.mxu1 %vm7396_vm1, %v7395_v2  ;;  %v6385_v12 = vld [vmem:[%s8745_s4 + $0x118] sm:$0xff] }
 0x404   :  { %6925 = vmatprep.subr.mxu1 %v7395_v2  ;;  %v6383_v14 = vld [vmem:[%s8745_s4 + $0x108] sm:$0xff] }
 0x407   :  { %v1648_v16 = vpop.f32.mrf.mxu0 }
 0x408   :  { %6913 = vmatmul.mubr.msk.f32.vlgmr.msra.gmra.mxu0 %vm722_vm2, %v1648_v16  ;;  %v6386_v16 = vld [vmem:[%s8745_s4 + $0x120] sm:$0xff] }
 0x409   :  { %v6874_v17 = vpop.f32.mrf.mxu0  ;;  %6921 = vmatpush3.msra.mxu0 %v715_v15  ;;  %6922 = vmatprep.mubr.msk.f32.mxu0 %vm7396_vm1, %v7395_v2  ;;  %v6382_v15 = vld [vmem:[%s8745_s4 + $0x100] sm:$0xff] }
 0x40a   :  { %6930 = vmatprep.subr.mxu0 %v7395_v2  ;;  %v7980_v17 = vld [vmem:[%s8745_s4 + $0x150] sm:$0xff] }
 0x40b   :  { %v1724_v19 = vpop.f32.mrf.mxu1 }
 0x40c   :  { %6918 = vmatmul.mubr.msk.f32.vlgmr.msra.gmra.mxu1 %vm722_vm2, %v1724_v19  ;;  %v7994_v19 = vld [vmem:[%s8745_s4 + $0x140] sm:$0xff] }
 0x40d   :  { %v6879_v20 = vpop.f32.mrf.mxu1  ;;  %6926 = vmatpush3.msra.mxu1 %v716_v18  ;;  %6927 = vmatprep.mubr.msk.f32.mxu1 %vm7396_vm1, %v7395_v2  ;;  %v7987_v18 = vld [vmem:[%s8745_s4 + $0x148] sm:$0xff] }
 0x40e   :  { %6935 = vmatprep.subr.mxu1 %v7395_v2  ;;  %v8001_v20 = vld [vmem:[%s8745_s4 + $0x160] sm:$0xff] }
 0x43c   :  { %v1800_v22 = vpop.f32.mrf.mxu0 }
 0x43d   :  { %6923 = vmatmul.mubr.msk.f32.vlgmr.msra.gmra.mxu0 %vm722_vm2, %v1800_v22  ;;  %v8015_v22 = vld [vmem:[%s8745_s4 + $0x188] sm:$0xff] }
 0x43e   :  { %v6884_v23 = vpop.f32.mrf.mxu0  ;;  %6931 = vmatpush3.msra.mxu0 %v717_v21  ;;  %6932 = vmatprep.mubr.msk.f32.mxu0 %vm7396_vm1, %v7395_v2  ;;  %v8008_v21 = vld [vmem:[%s8745_s4 + $0x190] sm:$0xff] }
 0x43f   :  { %6940 = vmatprep.subr.mxu0 %v7395_v2  ;;  %v8022_v23 = vld [vmem:[%s8745_s4 + $0x180] sm:$0xff] }
 0x440   :  { %v1876_v25 = vpop.f32.mrf.mxu1 }
 0x441   :  { %v1952_v27 = vpop.f32.mrf.mxu0  ;;  %6928 = vmatmul.mubr.msk.f32.vlgmr.msra.gmra.mxu1 %vm722_vm2, %v1876_v25  ;;  %v8036_v25 = vld [vmem:[%s8745_s4 + $0x1d0] sm:$0xff] }
 0x442   :  { %6933 = vmatmul.mubr.msk.f32.vlgmr.msra.gmra.mxu0 %vm722_vm2, %v1952_v27  ;;  %v6889_v28 = vpop.f32.mrf.mxu1  ;;  %6936 = vmatpush3.msra.mxu1 %v718_v24  ;;  %v8029_v24 = vld [vmem:[%s8745_s4 + $0x1a0] sm:$0xff]  ;;  %v8043_v27 = vld [vmem:[%s8745_s4 + $0x1c8] sm:$0xff] }
 0x443   :  { %v6894_v29 = vpop.f32.mrf.mxu0  ;;  %6937 = vmatprep.mubr.msk.f32.mxu1 %vm7396_vm1, %v7395_v2  ;;  %6951 = vmatprep.subr.mxu1 %v7395_v2 }
 0x444   :  { %v2028_v30 = vpop.f32.mrf.mxu1  ;;  %6948 = vmatprep.mubr.msk.f32.mxu0 %vm7396_vm1, %v7395_v2  ;;  %6941 = vmatpush3.msra.mxu0 %v6385_v12 }
 0x445   :  { %6938 = vmatmul.mubr.msk.f32.vlgmr.msra.gmra.mxu1 %vm722_vm2, %v2028_v30  ;;  %6942 = vmatprep.subr.mxu0 %v7395_v2 }
 0x446   :  { %v6899_v31 = vpop.f32.mrf.mxu1  ;;  %6959 = vmatprep.mubr.msk.f32.mxu1 %vm7396_vm1, %v7395_v2  ;;  %6952 = vmatpush3.msra.mxu1 %v6389_v13 }
 0x447   :  { %6953 = vmatprep.subr.mxu1 %v7395_v2  ;;  %6943 = vmatpush3.msra.mxu0 %v6384_v54 }
 0x448   :  { %6954 = vmatpush3.msra.mxu1 %v6388_v57  ;;  %6944 = vmatprep.subr.mxu0 %v7395_v2 }
 0x449   :  { %6955 = vmatprep.subr.mxu1 %v7395_v2  ;;  %6945 = vmatpush3.msra.mxu0 %v6383_v14 }
 0x44a   :  { %6946 = vmatprep.subr.mxu0 %v7395_v2 }
 0x44b   :  { %6947 = vmatpush3.msra.mxu0 %v6382_v15 }
 0x44c   :  { %6962 = vmatprep.subr.mxu0 %v7395_v2 }
 0x4be   :  { %v2101_v56 = vpop.f32.mrf.mxu0 }
 0x4bf   :  { %v2616_v39 = vsel %vm136_vm0, %v2101_v56, 0.0 }
 0x4c0   :  { %v6904_v32 = vpop.f32.mrf.mxu0 }
 0x4c1   :  { %v8056_v32 = vld [vmem:[%s8745_s4 + $0x1c0] sm:$0xff] }
 0x4c2   :  { %v2174_v33 = vpop.f32.mrf.mxu1 }
 0x4c3   :  { %v2617_v36 = vsel %vm136_vm0, %v2174_v33, 0.0 }
 0x4c4   :  { %v6909_v34 = vpop.f32.mrf.mxu1  ;;  %v2618_v43 = vadd.f32 %v2617_v36, %v2616_v39  ;;  %v6393_v39 = vld [vmem:[%s8745_s4 + $0x158] sm:$0xff] }
 0x4c8   :  { %v2247_v37 = vpop.f32.mrf.mxu0 }
 0x4c9   :  { %v2619_v40 = vsel %vm136_vm0, %v2247_v37, 0.0 }
 0x4ca   :  { %v6914_v44 = vpop.f32.mrf.mxu0  ;;  %v2620_v45 = vadd.f32 %v2619_v40, %v2618_v43  ;;  %v6397_v40 = vld [vmem:[%s8745_s4 + $0x178] sm:$0xff]  ;;  %v6396_v43 = vld [vmem:[%s8745_s4 + $0x170] sm:$0xff] }
 0x4cb   :  { %v6395_v44 = vld [vmem:[%s8745_s4 + $0x168] sm:$0xff] }
 0x4cc   :  { %v2320_v47 = vpop.f32.mrf.mxu1 }
 0x4cd   :  { %v2621_v0 = vsel %vm136_vm0, %v2320_v47, 0.0  ;;  %v8100_v47 = vld [vmem:[%s8745_s4 + $0x1b8] sm:$0xff] }
 0x4ce   :  { %v2622_v48 = vadd.f32 %v2621_v0, %v2620_v45  ;;  %v6919_v50 = vpop.f32.mrf.mxu1  ;;  %v8093_v45 = vld [vmem:[%s8745_s4 + $0x198] sm:$0xff]  ;;  %v8114_v0 = vld [vmem:[%s8745_s4 + $0x1a8] sm:$0xff] }
 0x4cf   :  { %v8128_v50 = vld [vmem:[%s8745_s4 + $0x1f8] sm:$0xff] }
 0x4d0   :  { %v2634_v51 = vadd.f32 %v2633_v63, %v2622_v48  ;;  %v8121_v48 = vld [vmem:[%s8745_s4 + $0x1d8] sm:$0xff] }
 0x4d2   :  { %v7925_v52 = vadd.f32 %v2634_v51, %v7501_v9  ;;  %v8135_v51 = vld [vmem:[%s8745_s4 + $0x1f0] sm:$0xff] }
 0x4d4   :  { %v2638_v53 = vsel %vm136_vm0, %v7925_v52, 0.0 }
 0x4d5   :  { %2639 = vadd.xlane.f32.xlu0 %v2638_v53 }
 0x4eb   :  { %3341 = vrot.lane.b32.xlu0 %v6384_v54, %s7397_s20 }
 0x4ef   :  { %3433 = vrot.lane.b32.xlu0 %v6388_v57, %s7397_s20 }
 0x4fd   :  { %v2393_v58 = vpop.f32.mrf.mxu0 }
 0x4fe   :  { %v2623_v60 = vsel %vm136_vm0, %v2393_v58, 0.0 }
 0x4ff   :  { %v6924_v59 = vpop.f32.mrf.mxu0 }
 0x501   :  { %v2466_v9 = vpop.f32.mrf.mxu1 }
 0x502   :  { %v2624_v61 = vsel %vm136_vm0, %v2466_v9, 0.0  ;;  %v2539_v62 = vpop.f32.mrf.mxu0  ;;  %v8153_v9 = vld [vmem:[%s8747_s6 + $0x9] ss:$0 sm:$0xff] }
 0x503   :  { %v2625_v1 = vadd.f32 %v2624_v61, %v2623_v60  ;;  %v6929_v3 = vpop.f32.mrf.mxu1  ;;  %v2626_v4 = vsel %vm136_vm0, %v2539_v62, 0.0  ;;  %v8158_v60 = vld [vmem:[%s8747_s6 + $0x8] ss:$0 sm:$0xff]  ;;  %v8167_v61 = vld [vmem:[%s8747_s6 + $0xb] ss:$0 sm:$0xff] }
 0x504   :  { %v6934_v5 = vpop.f32.mrf.mxu0  ;;  %v8172_v62 = vld [vmem:[%s8747_s6 + $0xa] ss:$0 sm:$0xff]  ;;  %v8186_v3 = vld [vmem:[%s8747_s6 + $0xc] ss:$0 sm:$0xff] }
 0x505   :  { %v2627_v6 = vadd.f32 %v2626_v4, %v2625_v1  ;;  %v2612_v7 = vpop.f32.mrf.mxu1  ;;  %v8181_v1 = vld [vmem:[%s8747_s6 + $0xd] ss:$0 sm:$0xff]  ;;  %v2667_v4 = vsub.s32 3, %v7911_v35  ;;  %v8196_v5 = vld [vmem:[%s8747_s6 + $0xf] ss:$0 sm:$0xff] }
 0x506   :  { %v2628_v8 = vsel %vm136_vm0, %v2612_v7, 0.0  ;;  %v2673_v7 = vsub.s32 4, %v7911_v35 }
 0x507   :  { %v2629_v46 = vadd.f32 %v2628_v8, %v2627_v6  ;;  %v6939_v10 = vpop.f32.mrf.mxu1  ;;  %v8201_v6 = vld [vmem:[%s8747_s6 + $0xe] ss:$0 sm:$0xff]  ;;  %v8209_v8 = vrot.slane %v7920_v42, %v2667_v4 }
 0x509   :  { %v2635_v11 = vadd.f32 %v2633_v63, %v2629_v46  ;;  %v8107_v63 = vld [vmem:[%s8745_s4 + $0x1b0] sm:$0xff] }
 0x50b   :  { %v7942_v49 = vadd.f32 %v2635_v11, %v7588_v26  ;;  %v6387_v26 = vld [vmem:[%s8745_s4 + $0x128] sm:$0xff]  ;;  %v8213_v11 = vrot.slane %v7920_v42, %v2673_v7 }
 0x50c   :  { %6956 = vmatpush3.msra.mxu1 %v6387_v26 }
 0x50d   :  { %v2641_v41 = vsel %vm136_vm0, %v7942_v49, 0.0  ;;  %6957 = vmatprep.subr.mxu1 %v7395_v2 }
 0x50e   :  { %2642 = vadd.xlane.f32.xlu1 %v2641_v41  ;;  %6958 = vmatpush3.msra.mxu1 %v6386_v16 }
 0x50f   :  { %6973 = vmatprep.subr.mxu1 %v7395_v2 }
 0x51f   :  { %3343 = vrot.lane.b32.xlu1 %v6385_v12, %s7397_s20 }
 0x523   :  { %3435 = vrot.lane.b32.xlu1 %v6389_v13, %s7397_s20 }
 0x527   :  { %3339 = vrot.lane.b32.xlu1 %v6383_v14, %s7397_s20 }
 0x52b   :  { %3337 = vrot.lane.b32.xlu1 %v6382_v15, %s7397_s20 }
 0x52f   :  { %3429 = vrot.lane.b32.xlu1 %v6386_v16, %s7397_s20 }
 0x533   :  { %3522 = vrot.lane.b32.xlu1 %v7980_v17, %s7397_s20 }
 0x537   :  { %3520 = vrot.lane.b32.xlu1 %v7987_v18, %s7397_s20 }
 0x53b   :  { %3518 = vrot.lane.b32.xlu1 %v7994_v19, %s7397_s20 }
 0x53f   :  { %3607 = vrot.lane.b32.xlu1 %v8001_v20, %s7397_s20 }
 0x543   :  { %3700 = vrot.lane.b32.xlu1 %v8008_v21, %s7397_s20 }
 0x547   :  { %3698 = vrot.lane.b32.xlu1 %v8015_v22, %s7397_s20 }
 0x54b   :  { %3696 = vrot.lane.b32.xlu1 %v8022_v23, %s7397_s20 }
 0x54f   :  { %3788 = vrot.lane.b32.xlu1 %v8029_v24, %s7397_s20 }
 0x553   :  { %3881 = vrot.lane.b32.xlu1 %v8036_v25, %s7397_s20 }
 0x557   :  { %3879 = vrot.lane.b32.xlu1 %v8043_v27, %s7397_s20 }
 0x55b   :  { %3877 = vrot.lane.b32.xlu1 %v8056_v32, %s7397_s20 }
 0x55e   :  { %v2640_v28 = vpop.xlane.xlu0 %2639 }
 0x55f   :  { %v2645_v29 = vmul.f32 0.03125, %v2640_v28  ;;  %3966 = vrot.lane.b32.xlu1 %v8063_v55, %s7397_s20 }
 0x561   :  { %v8048_v30 = vsub.f32 %v7925_v52, %v2645_v29  ;;  %v8142_v52 = vld [vmem:[%s8745_s4 + $0x1e8] sm:$0xff] }
 0x562   :  { %v8146_v53 = vpop.permute.xlu0 %3341 }
 0x563   :  { %v2649_v31 = vmul.f32 %v8048_v30, %v8048_v30  ;;  %3441 = vrot.lane.b32.xlu1 %v8153_v9, %s7397_s20 }
 0x565   :  { %v2651_v56 = vsel %vm136_vm0, %v2649_v31, 0.0 }
 0x566   :  { %2652 = vadd.xlane.f32.xlu0 %v2651_v56  ;;  %v8148_v54 = vpop.permute.xlu0 %3433 }
 0x567   :  { %3619 = vrot.lane.b32.xlu1 %v8167_v61, %s7397_s20 }
 0x56b   :  { %3800 = vrot.lane.b32.xlu1 %v8181_v1, %s7397_s20 }
 0x56f   :  { %3978 = vrot.lane.b32.xlu1 %v8196_v5, %s7397_s20 }
 0x57c   :  { %3431 = vrot.lane.b32.xlu0 %v6387_v26, %s7397_s20 }
 0x597   :  { %v2643_v33 = vpop.xlane.xlu1 %2642 }
 0x598   :  { %v2646_v34 = vmul.f32 0.03125, %v2643_v33 }
 0x59a   :  { %v8069_v36 = vsub.f32 %v7942_v49, %v2646_v34 }
 0x59b   :  { %v8231_v42 = vpop.permute.xlu1 %3343 }
 0x59c   :  { %v2650_v37 = vmul.f32 %v8069_v36, %v8069_v36 }
 0x59e   :  { %v2654_v38 = vsel %vm136_vm0, %v2650_v37, 0.0 }
 0x59f   :  { %2655 = vadd.xlane.f32.xlu0 %v2654_v38  ;;  %v8247_v12 = vpop.permute.xlu1 %3435 }
 0x5a3   :  { %v3340_v13 = vpop.permute.xlu1 %3339 }
 0x5a7   :  { %v3338_v26 = vpop.permute.xlu1 %3337 }
 0x5ab   :  { %v3430_v15 = vpop.permute.xlu1 %3429 }
 0x5b5   :  { %3524 = vrot.lane.b32.xlu0 %v6393_v39, %s7397_s20 }
 0x5b9   :  { %3613 = vrot.lane.b32.xlu0 %v6397_v40, %s7397_s20 }
 0x5bd   :  { %3611 = vrot.lane.b32.xlu0 %v6396_v43, %s7397_s20 }
 0x5c1   :  { %3609 = vrot.lane.b32.xlu0 %v6395_v44, %s7397_s20 }
 0x5c5   :  { %3702 = vrot.lane.b32.xlu0 %v8093_v45, %s7397_s20 }
 0x5c9   :  { %3794 = vrot.lane.b32.xlu0 %v8100_v47, %s7397_s20 }
 0x5cd   :  { %3792 = vrot.lane.b32.xlu0 %v8107_v63, %s7397_s20 }
 0x5d1   :  { %3790 = vrot.lane.b32.xlu0 %v8114_v0, %s7397_s20 }
 0x5d5   :  { %3883 = vrot.lane.b32.xlu0 %v8121_v48, %s7397_s20 }
 0x5d9   :  { %3972 = vrot.lane.b32.xlu0 %v8128_v50, %s7397_s20 }
 0x5dd   :  { %3970 = vrot.lane.b32.xlu0 %v8135_v51, %s7397_s20 }
 0x5e1   :  { %3968 = vrot.lane.b32.xlu0 %v8142_v52, %s7397_s20 }
 0x5e5   :  { %3349 = vrot.lane.b32.xlu0 %v8158_v60, %s7397_s20 }
 0x5e9   :  { %3530 = vrot.lane.b32.xlu0 %v8172_v62, %s7397_s20 }
 0x5ed   :  { %3708 = vrot.lane.b32.xlu0 %v8186_v3, %s7397_s20 }
 0x5ef   :  { %v2653_v57 = vpop.xlane.xlu0 %2652 }
 0x5f0   :  { %v2657_v58 = vmul.f32 0.03125, %v2653_v57 }
 0x5f1   :  { %3889 = vrot.lane.b32.xlu0 %v8201_v6, %s7397_s20 }
 0x5f2   :  { %v2659_v59 = vadd.f32 1e-05, %v2657_v58 }
 0x5f3   :  { %v3432_v14 = vpop.permute.xlu0 %3431 }
 0x5f4   :  { %7306 = vrsqrt.f32 %v2659_v59 }
 0x601   :  { %v7307_v46 = vpop.eup %7306 }
 0x602   :  { %v2663_v10 = vmul.f32 %v7307_v46, %v8048_v30 }
 0x604   :  { %v2669_v49 = vmul.f32 %v8209_v8, %v2663_v10 }
 0x606   :  { %v8217_v41 = vadd.f32 %v8213_v11, %v2669_v49 }
 0x608   :  { %6949 = vmatmul.mubr.msk.f32.vlgmr.msra.gmra.mxu0 %vm136_vm0, %v8217_v41  ;;  %6960 = vmatmul.mubr.msk.f32.vlgmr.msra.gmra.mxu1 %vm136_vm0, %v8217_v41 }
 0x609   :  { %6963 = vmatpush3.msra.mxu0 %v6393_v39  ;;  %6974 = vmatpush3.msra.mxu1 %v6397_v40 }
 0x60a   :  { %6964 = vmatprep.subr.mxu0 %v7395_v2  ;;  %6975 = vmatprep.subr.mxu1 %v7395_v2 }
 0x60b   :  { %6965 = vmatpush3.msra.mxu0 %v7980_v17  ;;  %6976 = vmatpush3.msra.mxu1 %v6396_v43 }
 0x60c   :  { %6966 = vmatprep.subr.mxu0 %v7395_v2  ;;  %6977 = vmatprep.subr.mxu1 %v7395_v2 }
 0x60d   :  { %6967 = vmatpush3.msra.mxu0 %v7987_v18  ;;  %6978 = vmatpush3.msra.mxu1 %v6395_v44 }
 0x60e   :  { %6968 = vmatprep.subr.mxu0 %v7395_v2  ;;  %6979 = vmatprep.subr.mxu1 %v7395_v2 }
 0x60f   :  { %6969 = vmatpush3.msra.mxu0 %v7994_v19  ;;  %6970 = vmatprep.mubr.msk.f32.mxu0 %vm7396_vm1, %v7395_v2 }
 0x610   :  { %6980 = vmatpush3.msra.mxu1 %v8001_v20  ;;  %6981 = vmatprep.mubr.msk.f32.mxu1 %vm7396_vm1, %v7395_v2  ;;  %v8267_v20 = vpop.permute.xlu1 %3522 }
 0x611   :  { %6971 = vmatmul.mubr.msk.f32.vlgmr.msra.gmra.mxu0 %vm136_vm0, %v8217_v41  ;;  %6982 = vmatmul.mubr.msk.f32.vlgmr.msra.gmra.mxu1 %vm136_vm0, %v8217_v41 }
 0x612   :  { %6984 = vmatprep.subr.mxu0 %v7395_v2  ;;  %6995 = vmatprep.subr.mxu1 %v7395_v2 }
 0x613   :  { %6985 = vmatpush3.msra.mxu0 %v8093_v45  ;;  %6996 = vmatpush3.msra.mxu1 %v8100_v47 }
 0x614   :  { %6986 = vmatprep.subr.mxu0 %v7395_v2  ;;  %6997 = vmatprep.subr.mxu1 %v7395_v2 }
 0x615   :  { %6987 = vmatpush3.msra.mxu0 %v8008_v21  ;;  %6998 = vmatpush3.msra.mxu1 %v8107_v63  ;;  %v45_v63 = vld [vmem:[%s8742_s1 + $0x8] sm:$0xff] }
 0x616   :  { %6988 = vmatprep.subr.mxu0 %v7395_v2  ;;  %6999 = vmatprep.subr.mxu1 %v7395_v2 }
 0x617   :  { %6989 = vmatpush3.msra.mxu0 %v8015_v22  ;;  %7000 = vmatpush3.msra.mxu1 %v8114_v0  ;;  %v8269_v22 = vpop.permute.xlu1 %3520 }
 0x618   :  { %6990 = vmatprep.subr.mxu0 %v7395_v2  ;;  %7001 = vmatprep.subr.mxu1 %v7395_v2 }
 0x619   :  { %6991 = vmatpush3.msra.mxu0 %v8022_v23  ;;  %7002 = vmatpush3.msra.mxu1 %v8029_v24 }
 0x61a   :  { %6992 = vmatprep.mubr.msk.f32.mxu0 %vm7396_vm1, %v7395_v2  ;;  %7003 = vmatprep.mubr.msk.f32.mxu1 %vm7396_vm1, %v7395_v2 }
 0x61b   :  { %7006 = vmatprep.subr.mxu0 %v7395_v2  ;;  %7017 = vmatprep.subr.mxu1 %v7395_v2  ;;  %v8273_v24 = vpop.permute.xlu1 %3518 }
 0x61f   :  { %v8279_v56 = vpop.permute.xlu1 %3607 }
 0x628   :  { %v2656_v16 = vpop.xlane.xlu0 %2655 }
 0x629   :  { %v2658_v17 = vmul.f32 0.03125, %v2656_v16 }
 0x62b   :  { %v2660_v18 = vadd.f32 1e-05, %v2658_v17 }
 0x62c   :  { %v3525_v19 = vpop.permute.xlu0 %3524 }
 0x62d   :  { %7308 = vrsqrt.f32 %v2660_v18 }
 0x630   :  { %v3614_v21 = vpop.permute.xlu0 %3613 }
 0x634   :  { %v8271_v23 = vpop.permute.xlu0 %3611 }
 0x638   :  { %v8276_v30 = vpop.permute.xlu0 %3609 }
 0x63a   :  { %v7309_v28 = vpop.eup %7308 }
 0x63b   :  { %v2664_v29 = vmul.f32 %v7309_v28, %v8069_v36  ;;  %v8296_v36 = vpop.permute.xlu1 %3700 }
 0x63c   :  { %v8288_v34 = vpop.permute.xlu0 %3702 }
 0x63d   :  { %v2670_v31 = vmul.f32 %v8209_v8, %v2664_v29 }
 0x63f   :  { %v8282_v33 = vadd.f32 %v8213_v11, %v2670_v31 }
 0x640   :  { %v3795_v37 = vpop.permute.xlu0 %3794 }
 0x641   :  { %6993 = vmatmul.mubr.msk.f32.vlgmr.msra.gmra.mxu0 %vm136_vm0, %v8282_v33  ;;  %7004 = vmatmul.mubr.msk.f32.vlgmr.msra.gmra.mxu1 %vm136_vm0, %v8282_v33 }
 0x642   :  { %7007 = vmatpush3.msra.mxu0 %v8121_v48  ;;  %7018 = vmatpush3.msra.mxu1 %v8128_v50 }
 0x643   :  { %7008 = vmatprep.subr.mxu0 %v7395_v2  ;;  %7019 = vmatprep.subr.mxu1 %v7395_v2 }
 0x644   :  { %7009 = vmatpush3.msra.mxu0 %v8036_v25  ;;  %7020 = vmatpush3.msra.mxu1 %v8135_v51  ;;  %v3699_v25 = vpop.permute.xlu1 %3698 }
 0x645   :  { %7010 = vmatprep.subr.mxu0 %v7395_v2  ;;  %7021 = vmatprep.subr.mxu1 %v7395_v2 }
 0x646   :  { %7011 = vmatpush3.msra.mxu0 %v8043_v27  ;;  %7022 = vmatpush3.msra.mxu1 %v8142_v52  ;;  %v3793_v27 = vpop.permute.xlu0 %3792 }
 0x647   :  { %7012 = vmatprep.subr.mxu0 %v7395_v2  ;;  %7023 = vmatprep.subr.mxu1 %v7395_v2 }
 0x648   :  { %7013 = vmatpush3.msra.mxu0 %v8056_v32  ;;  %7014 = vmatprep.mubr.msk.f32.mxu0 %vm7396_vm1, %v7395_v2  ;;  %v3697_v32 = vpop.permute.xlu1 %3696 }
 0x649   :  { %7024 = vmatpush3.msra.mxu1 %v8063_v55  ;;  %7025 = vmatprep.mubr.msk.f32.mxu1 %vm7396_vm1, %v7395_v2  ;;  %v44_v55 = vld [vmem:[%s8742_s1] sm:$0xff] }
 0x64a   :  { %7015 = vmatmul.mubr.msk.f32.vlgmr.msra.gmra.mxu0 %vm136_vm0, %v8282_v33  ;;  %7026 = vmatmul.mubr.msk.f32.vlgmr.msra.gmra.mxu1 %vm136_vm0, %v8282_v33  ;;  %v3791_v38 = vpop.permute.xlu0 %3790 }
 0x64b   :  { %7028 = vmatprep.subr.mxu0 %v7395_v2  ;;  %7039 = vmatprep.subr.mxu1 %v7395_v2 }
 0x64c   :  { %7029 = vmatpush3.msra.mxu0 %v8231_v42  ;;  %7040 = vmatpush3.msra.mxu1 %v8247_v12  ;;  %v3789_v39 = vpop.permute.xlu1 %3788 }
 0x64d   :  { %7030 = vmatprep.subr.mxu0 %v7395_v2  ;;  %7041 = vmatprep.subr.mxu1 %v7395_v2 }
 0x64e   :  { %7031 = vmatpush3.msra.mxu0 %v8146_v53  ;;  %7042 = vmatpush3.msra.mxu1 %v8148_v54  ;;  %v3884_v40 = vpop.permute.xlu0 %3883 }
 0x64f   :  { %7032 = vmatprep.subr.mxu0 %v7395_v2  ;;  %7043 = vmatprep.subr.mxu1 %v7395_v2 }
 0x650   :  { %7033 = vmatpush3.msra.mxu0 %v3340_v13  ;;  %7044 = vmatpush3.msra.mxu1 %v3432_v14  ;;  %v3882_v43 = vpop.permute.xlu1 %3881 }
 0x651   :  { %7034 = vmatprep.subr.mxu0 %v7395_v2  ;;  %7045 = vmatprep.subr.mxu1 %v7395_v2 }
 0x652   :  { %7035 = vmatpush3.msra.mxu0 %v3338_v26  ;;  %7036 = vmatprep.mubr.msk.f32.mxu0 %vm7396_vm1, %v7395_v2  ;;  %v3973_v44 = vpop.permute.xlu0 %3972 }
 0x653   :  { %7046 = vmatpush3.msra.mxu1 %v3430_v15  ;;  %7047 = vmatprep.mubr.msk.f32.mxu1 %vm7396_vm1, %v7395_v2 }
 0x654   :  { %7037 = vmatmul.mubr.msk.f32.vlgmr.msra.gmra.mxu0 %vm136_vm0, %v44_v55  ;;  %7048 = vmatmul.mubr.msk.f32.vlgmr.msra.gmra.mxu1 %vm136_vm0, %v44_v55  ;;  %v3880_v45 = vpop.permute.xlu1 %3879 }
 0x655   :  { %7050 = vmatprep.subr.mxu0 %v7395_v2  ;;  %7061 = vmatprep.subr.mxu1 %v7395_v2 }
 0x656   :  { %7051 = vmatpush3.msra.mxu0 %v3525_v19  ;;  %7062 = vmatpush3.msra.mxu1 %v3614_v21  ;;  %v3971_v47 = vpop.permute.xlu0 %3970 }
 0x657   :  { %7052 = vmatprep.subr.mxu0 %v7395_v2  ;;  %7063 = vmatprep.subr.mxu1 %v7395_v2 }
 0x658   :  { %7053 = vmatpush3.msra.mxu0 %v8267_v20  ;;  %7064 = vmatpush3.msra.mxu1 %v8271_v23  ;;  %v3878_v0 = vpop.permute.xlu1 %3877 }
 0x659   :  { %7054 = vmatprep.subr.mxu0 %v7395_v2  ;;  %7065 = vmatprep.subr.mxu1 %v7395_v2 }
 0x65a   :  { %7055 = vmatpush3.msra.mxu0 %v8269_v22  ;;  %7066 = vmatpush3.msra.mxu1 %v8276_v30  ;;  %v3969_v48 = vpop.permute.xlu0 %3968 }
 0x65b   :  { %7056 = vmatprep.subr.mxu0 %v7395_v2  ;;  %7067 = vmatprep.subr.mxu1 %v7395_v2 }
 0x65c   :  { %7057 = vmatpush3.msra.mxu0 %v8273_v24  ;;  %7058 = vmatprep.mubr.msk.f32.mxu0 %vm7396_vm1, %v7395_v2  ;;  %v3967_v50 = vpop.permute.xlu1 %3966 }
 0x65d   :  { %7068 = vmatpush3.msra.mxu1 %v8279_v56  ;;  %7069 = vmatprep.mubr.msk.f32.mxu1 %vm7396_vm1, %v7395_v2 }
 0x65e   :  { %7059 = vmatmul.mubr.msk.f32.vlgmr.msra.gmra.mxu0 %vm136_vm0, %v44_v55  ;;  %7070 = vmatmul.mubr.msk.f32.vlgmr.msra.gmra.mxu1 %vm136_vm0, %v44_v55  ;;  %v3350_v13 = vpop.permute.xlu0 %3349 }
 0x65f   :  { %7072 = vmatprep.subr.mxu0 %v7395_v2  ;;  %7083 = vmatprep.subr.mxu1 %v7395_v2 }
 0x660   :  { %7073 = vmatpush3.msra.mxu0 %v8288_v34  ;;  %7084 = vmatpush3.msra.mxu1 %v3795_v37  ;;  %v3442_v26 = vpop.permute.xlu1 %3441 }
 0x661   :  { %7074 = vmatprep.subr.mxu0 %v7395_v2  ;;  %7085 = vmatprep.subr.mxu1 %v7395_v2 }
 0x662   :  { %7075 = vmatpush3.msra.mxu0 %v8296_v36  ;;  %7086 = vmatpush3.msra.mxu1 %v3793_v27  ;;  %v3531_v22 = vpop.permute.xlu0 %3530 }
 0x663   :  { %7076 = vmatprep.subr.mxu0 %v7395_v2  ;;  %7087 = vmatprep.subr.mxu1 %v7395_v2 }
 0x664   :  { %7077 = vmatpush3.msra.mxu0 %v3699_v25  ;;  %7088 = vmatpush3.msra.mxu1 %v3791_v38  ;;  %v3620_v23 = vpop.permute.xlu1 %3619 }
 0x665   :  { %7078 = vmatprep.subr.mxu0 %v7395_v2  ;;  %7089 = vmatprep.subr.mxu1 %v7395_v2 }
 0x666   :  { %7079 = vmatpush3.msra.mxu0 %v3697_v32  ;;  %7080 = vmatprep.mubr.msk.f32.mxu0 %vm7396_vm1, %v7395_v2  ;;  %v3709_v34 = vpop.permute.xlu0 %3708 }
 0x667   :  { %7090 = vmatpush3.msra.mxu1 %v3789_v39  ;;  %7091 = vmatprep.mubr.msk.f32.mxu1 %vm7396_vm1, %v7395_v2 }
 0x668   :  { %7081 = vmatmul.mubr.msk.f32.vlgmr.msra.gmra.mxu0 %vm136_vm0, %v45_v63  ;;  %7092 = vmatmul.mubr.msk.f32.vlgmr.msra.gmra.mxu1 %vm136_vm0, %v45_v63  ;;  %v3801_v36 = vpop.permute.xlu1 %3800 }
 0x669   :  { %7094 = vmatprep.subr.mxu0 %v7395_v2  ;;  %7105 = vmatprep.subr.mxu1 %v7395_v2 }
 0x66a   :  { %7095 = vmatpush3.msra.mxu0 %v3884_v40  ;;  %7106 = vmatpush3.msra.mxu1 %v3973_v44  ;;  %v3890_v39 = vpop.permute.xlu0 %3889 }
 0x66b   :  { %7096 = vmatprep.subr.mxu0 %v7395_v2  ;;  %7107 = vmatprep.subr.mxu1 %v7395_v2 }
 0x66c   :  { %7097 = vmatpush3.msra.mxu0 %v3882_v43  ;;  %7108 = vmatpush3.msra.mxu1 %v3971_v47  ;;  %v3979_v40 = vpop.permute.xlu1 %3978 }
 0x66d   :  { %7098 = vmatprep.subr.mxu0 %v7395_v2  ;;  %7109 = vmatprep.subr.mxu1 %v7395_v2 }
 0x66e   :  { %7099 = vmatpush3.msra.mxu0 %v3880_v45  ;;  %7110 = vmatpush3.msra.mxu1 %v3969_v48 }
 0x66f   :  { %7100 = vmatprep.subr.mxu0 %v7395_v2  ;;  %7111 = vmatprep.subr.mxu1 %v7395_v2 }
 0x670   :  { %7101 = vmatpush3.msra.mxu0 %v3878_v0  ;;  %7102 = vmatprep.mubr.msk.f32.mxu0 %vm7396_vm1, %v7395_v2 }
 0x671   :  { %7112 = vmatpush3.msra.mxu1 %v3967_v50  ;;  %7113 = vmatprep.mubr.msk.f32.mxu1 %vm7396_vm1, %v7395_v2 }
 0x672   :  { %7103 = vmatmul.mubr.msk.f32.vlgmr.msra.gmra.mxu0 %vm136_vm0, %v45_v63  ;;  %7114 = vmatmul.mubr.msk.f32.vlgmr.msra.gmra.mxu1 %vm136_vm0, %v45_v63 }
 0x673   :  { %7116 = vmatprep.subr.mxu0 %v7395_v2  ;;  %7121 = vmatprep.subr.mxu1 %v7395_v2 }
 0x674   :  { %7118 = vmatprep.mubr.msk.f32.mxu0 %vm7396_vm1, %v7395_v2  ;;  %7123 = vmatprep.mubr.msk.f32.mxu1 %vm7396_vm1, %v7395_v2 }
 0x6c8   :  { %v2836_v51 = vpop.f32.mrf.mxu0  ;;  %v2906_v52 = vpop.f32.mrf.mxu1 }
 0x6c9   :  { %v2837_v20 = vadd.f32 %v8158_v60, %v2836_v51  ;;  %v2907_v21 = vadd.f32 %v8153_v9, %v2906_v52 }
 0x6ca   :  { %v6950_v53 = vpop.f32.mrf.mxu0  ;;  %v6961_v54 = vpop.f32.mrf.mxu1 }
 0x6d1   :  { %v2976_v57 = vpop.f32.mrf.mxu0  ;;  %v3046_v58 = vpop.f32.mrf.mxu1 }
 0x6d2   :  { %v2977_v31 = vadd.f32 %v8172_v62, %v2976_v57  ;;  %v3047_v56 = vadd.f32 %v8167_v61, %v3046_v58 }
 0x6d3   :  { %v6972_v59 = vpop.f32.mrf.mxu0  ;;  %v6983_v4 = vpop.f32.mrf.mxu1 }
 0x6d4   :  { %v6456_v59 = vld [vmem:[%s8744_s3 + $0x2] ss:$0 sm:$0xff] }
 0x701   :  { %v3119_v7 = vpop.f32.mrf.mxu0  ;;  %v3189_v8 = vpop.f32.mrf.mxu1 }
 0x702   :  { %v3120_v55 = vadd.f32 %v8186_v3, %v3119_v7  ;;  %v3190_v38 = vadd.f32 %v8181_v1, %v3189_v8  ;;  %v6457_v7 = vld [vmem:[%s8744_s3 + $0x3] ss:$0 sm:$0xff] }
 0x703   :  { %v6994_v46 = vpop.f32.mrf.mxu0  ;;  %v7005_v10 = vpop.f32.mrf.mxu1 }
 0x70a   :  { %v8394_v11 = vpop.f32.mrf.mxu0  ;;  %v8396_v49 = vpop.f32.mrf.mxu1 }
 0x70b   :  { %v3260_v63 = vadd.f32 %v8201_v6, %v8394_v11  ;;  %v3330_v0 = vadd.f32 %v8196_v5, %v8396_v49  ;;  %v6454_v6 = vld [vmem:[%s8744_s3] ss:$0 sm:$0xff]  ;;  %v6455_v5 = vld [vmem:[%s8744_s3 + $0x1] ss:$0 sm:$0xff] }
 0x70c   :  { %v7016_v42 = vpop.f32.mrf.mxu0  ;;  %v7027_v12 = vpop.f32.mrf.mxu1 }
 0x714   :  { %v3510_v14 = vpop.f32.mrf.mxu1  ;;  %v3421_v15 = vpop.f32.mrf.mxu0 }
 0x715   :  { %v8398_v16 = vadd.f32 %v3510_v14, %v3442_v26  ;;  %v8400_v17 = vadd.f32 %v3421_v15, %v3350_v13  ;;  %v6459_v13 = vld [vmem:[%s8744_s3 + $0x5] ss:$0 sm:$0xff]  ;;  %v6458_v26 = vld [vmem:[%s8744_s3 + $0x4] ss:$0 sm:$0xff] }
 0x716   :  { %v7038_v18 = vpop.f32.mrf.mxu0  ;;  %v7049_v19 = vpop.f32.mrf.mxu1 }
 0x717   :  { %7117 = vmatpush3.xpose.msk.msra.mxu0 %vm722_vm2, %v8400_v17  ;;  %7122 = vmatpush3.xpose.msk.msra.mxu1 %vm722_vm2, %v8398_v16 }
 0x718   :  { %7126 = vmatprep.subr.mxu0 %v7395_v2  ;;  %7131 = vmatprep.subr.mxu1 %v7395_v2 }
 0x71a   :  { %7119 = vmatmul.mubr.msk.f32.vlgmr.msra.gmra.mxu0 %vm722_vm2, %v2837_v20  ;;  %7124 = vmatmul.mubr.msk.f32.vlgmr.msra.gmra.mxu1 %vm722_vm2, %v2907_v21 }
 0x71b   :  { %7128 = vmatprep.mubr.msk.f32.mxu0 %vm7396_vm1, %v7395_v2  ;;  %7133 = vmatprep.mubr.msk.f32.mxu1 %vm7396_vm1, %v7395_v2 }
 0x71e   :  { %v3688_v24 = vpop.f32.mrf.mxu1  ;;  %v3599_v60 = vpop.f32.mrf.mxu0 }
 0x71f   :  { %v8416_v28 = vadd.f32 %v3688_v24, %v3620_v23  ;;  %v8418_v9 = vadd.f32 %v3599_v60, %v3531_v22  ;;  %v6460_v24 = vld [vmem:[%s8744_s3 + $0x6] ss:$0 sm:$0xff]  ;;  %v6461_v60 = vld [vmem:[%s8744_s3 + $0x7] ss:$0 sm:$0xff] }
 0x720   :  { %v7060_v29 = vpop.f32.mrf.mxu0  ;;  %v7071_v30 = vpop.f32.mrf.mxu1 }
 0x721   :  { %7127 = vmatpush3.xpose.msk.msra.mxu0 %vm722_vm2, %v8418_v9  ;;  %7132 = vmatpush3.xpose.msk.msra.mxu1 %vm722_vm2, %v8416_v28 }
 0x722   :  { %7136 = vmatprep.subr.mxu0 %v7395_v2  ;;  %7141 = vmatprep.subr.mxu1 %v7395_v2 }
 0x724   :  { %7129 = vmatmul.mubr.msk.f32.vlgmr.msra.gmra.mxu0 %vm722_vm2, %v2977_v31  ;;  %7134 = vmatmul.mubr.msk.f32.vlgmr.msra.gmra.mxu1 %vm722_vm2, %v3047_v56 }
 0x725   :  { %7138 = vmatprep.mubr.msk.f32.mxu0 %vm7396_vm1, %v7395_v2  ;;  %7143 = vmatprep.mubr.msk.f32.mxu1 %vm7396_vm1, %v7395_v2 }
 0x728   :  { %v3869_v37 = vpop.f32.mrf.mxu1  ;;  %v3780_v62 = vpop.f32.mrf.mxu0 }
 0x729   :  { %v8434_v25 = vadd.f32 %v3869_v37, %v3801_v36  ;;  %v8436_v61 = vadd.f32 %v3780_v62, %v3709_v34 }
 0x72a   :  { %v7082_v27 = vpop.f32.mrf.mxu0  ;;  %v7093_v32 = vpop.f32.mrf.mxu1 }
 0x72b   :  { %7137 = vmatpush3.xpose.msk.msra.mxu0 %vm722_vm2, %v8436_v61  ;;  %7142 = vmatpush3.xpose.msk.msra.mxu1 %vm722_vm2, %v8434_v25 }
 0x72c   :  { %7146 = vmatprep.subr.mxu0 %v7395_v2  ;;  %7151 = vmatprep.subr.mxu1 %v7395_v2 }
 0x72e   :  { %7139 = vmatmul.mubr.msk.f32.vlgmr.msra.gmra.mxu0 %vm722_vm2, %v3120_v55  ;;  %7144 = vmatmul.mubr.msk.f32.vlgmr.msra.gmra.mxu1 %vm722_vm2, %v3190_v38 }
 0x72f   :  { %7148 = vmatprep.mubr.msk.f32.mxu0 %vm7396_vm1, %v7395_v2  ;;  %7153 = vmatprep.mubr.msk.f32.mxu1 %vm7396_vm1, %v7395_v2 }
 0x732   :  { %v4047_v43 = vpop.f32.mrf.mxu1  ;;  %v3958_v3 = vpop.f32.mrf.mxu0 }
 0x733   :  { %v8452_v44 = vadd.f32 %v4047_v43, %v3979_v40  ;;  %v8454_v1 = vadd.f32 %v3958_v3, %v3890_v39 }
 0x734   :  { %v7104_v45 = vpop.f32.mrf.mxu0  ;;  %v7115_v47 = vpop.f32.mrf.mxu1 }
 0x735   :  { %7147 = vmatpush3.xpose.msk.msra.mxu0 %vm722_vm2, %v8454_v1  ;;  %7152 = vmatpush3.xpose.msk.msra.mxu1 %vm722_vm2, %v8452_v44 }
 0x736   :  { %7156 = vmatprep.subr.mxu0 %v7395_v2  ;;  %7161 = vmatprep.subr.mxu1 %v7395_v2 }
 0x738   :  { %7149 = vmatmul.mubr.msk.f32.vlgmr.msra.gmra.mxu0 %vm722_vm2, %v3260_v63  ;;  %7154 = vmatmul.mubr.msk.f32.vlgmr.msra.gmra.mxu1 %vm722_vm2, %v3330_v0 }
 0x739   :  { %7158 = vmatprep.mubr.msk.f32.mxu0 %vm7396_vm1, %v7395_v2  ;;  %7163 = vmatprep.mubr.msk.f32.mxu1 %vm7396_vm1, %v7395_v2 }
 0x7da   :  { %v4188_v48 = vpop.f32.mrf.mxu0  ;;  %v4264_v50 = vpop.f32.mrf.mxu1 }
 0x7db   :  { %v4189_v51 = vadd.f32 %v6454_v6, %v4188_v48  ;;  %v4265_v52 = vadd.f32 %v6455_v5, %v4264_v50 }
 0x7dc   :  { %v7120_v53 = vpop.f32.mrf.mxu0  ;;  %v7125_v54 = vpop.f32.mrf.mxu1 }
 0x7dd   :  { %v4727_v57 = vsel %vm722_vm2, %v4265_v52, -inf  ;;  %v4724_v58 = vsel %vm722_vm2, %v4189_v51, -inf }
 0x7de   :  { %4728 = vmax.xlane.f32.xlu1 %v4727_v57  ;;  %4725 = vmax.xlane.f32.xlu0 %v4724_v58 }
 0x7e4   :  { %v4340_v4 = vpop.f32.mrf.mxu0  ;;  %v4416_v8 = vpop.f32.mrf.mxu1 }
 0x7e5   :  { %v4341_v46 = vadd.f32 %v6456_v59, %v4340_v4  ;;  %v4417_v49 = vadd.f32 %v6457_v7, %v4416_v8 }
 0x7e6   :  { %v7130_v10 = vpop.f32.mrf.mxu0  ;;  %v7135_v11 = vpop.f32.mrf.mxu1 }
 0x7e7   :  { %v4730_v42 = vsel %vm722_vm2, %v4341_v46, -inf  ;;  %v4733_v12 = vsel %vm722_vm2, %v4417_v49, -inf }
 0x7e8   :  { %4731 = vmax.xlane.f32.xlu0 %v4730_v42 }
 0x7ec   :  { %4734 = vmax.xlane.f32.xlu0 %v4733_v12 }
 0x7ee   :  { %v4568_v14 = vpop.f32.mrf.mxu1  ;;  %v4492_v15 = vpop.f32.mrf.mxu0 }
 0x7ef   :  { %v4569_v18 = vadd.f32 %v6459_v13, %v4568_v14  ;;  %v4493_v19 = vadd.f32 %v6458_v26, %v4492_v15 }
 0x7f0   :  { %v7140_v20 = vpop.f32.mrf.mxu0  ;;  %v7145_v21 = vpop.f32.mrf.mxu1 }
 0x7f1   :  { %v4739_v22 = vsel %vm722_vm2, %v4569_v18, -inf  ;;  %v4736_v23 = vsel %vm722_vm2, %v4493_v19, -inf }
 0x7f2   :  { %4740 = vmax.xlane.f32.xlu0 %v4739_v22  ;;  %4737 = vmax.xlane.f32.xlu1 %v4736_v23 }
 0x7f8   :  { %v4644_v29 = vpop.f32.mrf.mxu0  ;;  %v4720_v30 = vpop.f32.mrf.mxu1 }
 0x7f9   :  { %v4645_v31 = vadd.f32 %v6460_v24, %v4644_v29  ;;  %v4721_v56 = vadd.f32 %v6461_v60, %v4720_v30 }
 0x7fa   :  { %v7150_v34 = vpop.f32.mrf.mxu0  ;;  %v7155_v36 = vpop.f32.mrf.mxu1 }
 0x7fb   :  { %v4745_v37 = vsel %vm722_vm2, %v4721_v56, -inf  ;;  %v4742_v62 = vsel %vm722_vm2, %v4645_v31, -inf }
 0x7fc   :  { %4746 = vmax.xlane.f32.xlu0 %v4745_v37  ;;  %4743 = vmax.xlane.f32.xlu1 %v4742_v62 }
 0x80d   :  { %4820 = vrot.lane.b32.xlu1 %v8400_v17, %s7397_s20 }
 0x811   :  { %4972 = vrot.lane.b32.xlu1 %v8418_v9, %s7397_s20 }
 0x812   :  { %4896 = vrot.lane.b32.xlu0 %v8398_v16, %s7397_s20 }
 0x815   :  { %5048 = vrot.lane.b32.xlu1 %v8416_v28, %s7397_s20 }
 0x816   :  { %5124 = vrot.lane.b32.xlu0 %v8436_v61, %s7397_s20 }
 0x819   :  { %5200 = vrot.lane.b32.xlu1 %v8434_v25, %s7397_s20 }
 0x867   :  { %v4729_v27 = vpop.xlane.xlu1 %4728  ;;  %v4726_v32 = vpop.xlane.xlu0 %4725 }
 0x868   :  { %v4749_v55 = vsub.f32 %v4265_v52, %v4729_v27  ;;  %v4748_v38 = vsub.f32 %v4189_v51, %v4726_v32 }
 0x86a   :  { %v4758_v17 = vmul.f32 1.442695, %v4749_v55  ;;  %v4756_v39 = vmul.f32 1.442695, %v4748_v38 }
 0x86c   :  { %7310 = vpow2.f32 %v4758_v17 }
 0x86d   :  { %7312 = vpow2.f32 %v4756_v39 }
 0x871   :  { %v4732_v9 = vpop.xlane.xlu0 %4731 }
 0x872   :  { %v4750_v40 = vsub.f32 %v4341_v46, %v4732_v9 }
 0x874   :  { %v4760_v16 = vmul.f32 1.442695, %v4750_v40 }
 0x875   :  { %v4735_v43 = vpop.xlane.xlu0 %4734 }
 0x876   :  { %7314 = vpow2.f32 %v4760_v16  ;;  %v4751_v28 = vsub.f32 %v4417_v49, %v4735_v43 }
 0x878   :  { %v4762_v3 = vmul.f32 1.442695, %v4751_v28 }
 0x879   :  { %v8516_v45 = vpop.eup %7310 }
 0x87a   :  { %v8518_v61 = vpop.eup %7312  ;;  %7316 = vpow2.f32 %v4762_v3  ;;  %v4775_v25 = vsel %vm722_vm2, %v8516_v45, 0.0 }
 0x87b   :  { %v4741_v47 = vpop.xlane.xlu0 %4740  ;;  %v4738_v63 = vpop.xlane.xlu1 %4737  ;;  %4776 = vadd.xlane.f32.xlu0 %v4775_v25  ;;  %v4772_v0 = vsel %vm722_vm2, %v8518_v61, 0.0  ;;  %v6449_v25 = vld [vmem:[%s8746_s5 + $0x58] sm:$0xff] }
 0x87c   :  { %v4753_v6 = vsub.f32 %v4569_v18, %v4741_v47  ;;  %v4752_v5 = vsub.f32 %v4493_v19, %v4738_v63  ;;  %4773 = vadd.xlane.f32.xlu1 %v4772_v0  ;;  %v6448_v63 = vld [vmem:[%s8746_s5 + $0x50] sm:$0xff] }
 0x87e   :  { %v4766_v48 = vmul.f32 1.442695, %v4753_v6  ;;  %v4764_v50 = vmul.f32 1.442695, %v4752_v5 }
 0x880   :  { %7318 = vpow2.f32 %v4766_v48  ;;  %v6450_v48 = vld [vmem:[%s8746_s5 + $0x60] sm:$0xff] }
 0x881   :  { %7320 = vpow2.f32 %v4764_v50 }
 0x883   :  { %v8524_v51 = vpop.eup %7314 }
 0x884   :  { %v4778_v52 = vsel %vm722_vm2, %v8524_v51, 0.0 }
 0x885   :  { %v4747_v53 = vpop.xlane.xlu0 %4746  ;;  %v4744_v54 = vpop.xlane.xlu1 %4743  ;;  %4779 = vadd.xlane.f32.xlu1 %v4778_v52  ;;  %v6451_v52 = vld [vmem:[%s8746_s5 + $0x68] sm:$0xff] }
 0x886   :  { %v4755_v57 = vsub.f32 %v4721_v56, %v4747_v53  ;;  %v4754_v58 = vsub.f32 %v4645_v31, %v4744_v54 }
 0x887   :  { %v8528_v59 = vpop.eup %7316 }
 0x888   :  { %v4770_v4 = vmul.f32 1.442695, %v4755_v57  ;;  %v4768_v7 = vmul.f32 1.442695, %v4754_v58  ;;  %v4781_v8 = vsel %vm722_vm2, %v8528_v59, 0.0  ;;  %v6453_v57 = vld [vmem:[%s8746_s5 + $0x78] sm:$0xff] }
 0x889   :  { %v4897_v46 = vpop.permute.xlu0 %4896  ;;  %v4821_v10 = vpop.permute.xlu1 %4820  ;;  %4782 = vadd.xlane.f32.xlu0 %v4781_v8 }
 0x88a   :  { %7322 = vpow2.f32 %v4770_v4  ;;  %7157 = vmatpush3.msra.mxu0 %v4821_v10  ;;  %7162 = vmatpush3.msra.mxu1 %v4897_v46 }
 0x88b   :  { %7324 = vpow2.f32 %v4768_v7  ;;  %7171 = vmatprep.subr.mxu1 %v7395_v2  ;;  %7166 = vmatprep.subr.mxu0 %v7395_v2 }
 0x88d   :  { %v8534_v11 = vpop.eup %7318  ;;  %v4973_v18 = vpop.permute.xlu1 %4972 }
 0x88e   :  { %v8536_v49 = vpop.eup %7320  ;;  %v4787_v42 = vsel %vm722_vm2, %v8534_v11, 0.0  ;;  %v5125_v20 = vpop.permute.xlu0 %5124 }
 0x88f   :  { %4788 = vadd.xlane.f32.xlu0 %v4787_v42  ;;  %v4784_v12 = vsel %vm722_vm2, %v8536_v49, 0.0 }
 0x890   :  { %4785 = vadd.xlane.f32.xlu1 %v4784_v12 }
 0x891   :  { %v5049_v19 = vpop.permute.xlu1 %5048 }
 0x895   :  { %v5201_v21 = vpop.permute.xlu1 %5200 }
 0x897   :  { %v8542_v13 = vpop.eup %7322 }
 0x898   :  { %v8544_v26 = vpop.eup %7324  ;;  %v4793_v14 = vsel %vm722_vm2, %v8542_v13, 0.0 }
 0x899   :  { %4794 = vadd.xlane.f32.xlu0 %v4793_v14  ;;  %v4790_v15 = vsel %vm722_vm2, %v8544_v26, 0.0 }
 0x89a   :  { %4791 = vadd.xlane.f32.xlu1 %v4790_v15 }
 0x8ab   :  { %5352 = vrot.lane.b32.xlu1 %v8452_v44, %s7397_s20 }
 0x8af   :  { %5276 = vrot.lane.b32.xlu0 %v8454_v1, %s7397_s20 }
 0x904   :  { %v4777_v22 = vpop.xlane.xlu0 %4776 }
 0x905   :  { %7326 = vrcp.f32 %v4777_v22  ;;  %v4774_v23 = vpop.xlane.xlu1 %4773 }
 0x906   :  { %7328 = vrcp.f32 %v4774_v23 }
 0x90e   :  { %v4780_v24 = vpop.xlane.xlu1 %4779 }
 0x90f   :  { %7330 = vrcp.f32 %v4780_v24  ;;  %v8657_v24 = vld [vmem:[%s8751_s10] sm:$0xff] }
 0x912   :  { %v7327_v60 = vpop.eup %7326  ;;  %v4783_v29 = vpop.xlane.xlu0 %4782 }
 0x913   :  { %v7329_v30 = vpop.eup %7328  ;;  %7332 = vrcp.f32 %v4783_v29  ;;  %v4799_v31 = vmul.f32 %v7327_v60, %v8516_v45  ;;  %v6446_v45 = vld [vmem:[%s8746_s5 + $0x40] sm:$0xff] }
 0x914   :  { %v4797_v44 = vmul.f32 %v7329_v30, %v8518_v61  ;;  %v6447_v61 = vld [vmem:[%s8746_s5 + $0x48] sm:$0xff] }
 0x915   :  { %4813 = vst.msk [vmem:[#allocation4 + $0x8] sm:$0xff] %vm722_vm2, %v4799_v31  ;;  %7164 = vmatmul.mubr.msk.f32.vlgmr.msra.gmra.mxu1 %vm722_vm2, %v4799_v31 }
 0x916   :  { %4812 = vst.msk [vmem:[#allocation4] sm:$0xff] %vm722_vm2, %v4797_v44  ;;  %7159 = vmatmul.mubr.msk.f32.vlgmr.msra.gmra.mxu0 %vm722_vm2, %v4797_v44  ;;  %7172 = vmatpush3.msra.mxu1 %v5049_v19  ;;  %v6028_v19 = vsub.s32 1, %v7911_v35 }
 0x917   :  { %7167 = vmatpush3.msra.mxu0 %v4973_v18  ;;  %7168 = vmatprep.mubr.msk.f32.mxu0 %vm7396_vm1, %v7395_v2 }
 0x918   :  { %v4789_v1 = vpop.xlane.xlu0 %4788  ;;  %7176 = vmatprep.subr.mxu0 %v7395_v2  ;;  %7173 = vmatprep.mubr.msk.f32.mxu1 %vm7396_vm1, %v7395_v2  ;;  %v6029_v60 = vrot.slane %v8657_v24, %v6028_v19 }
 0x919   :  { %7334 = vrcp.f32 %v4789_v1  ;;  %v4786_v56 = vpop.xlane.xlu1 %4785  ;;  %7181 = vmatprep.subr.mxu1 %v7395_v2 }
 0x91a   :  { %7336 = vrcp.f32 %v4786_v56 }
 0x91c   :  { %v7331_v34 = vpop.eup %7330 }
 0x91d   :  { %v4801_v36 = vmul.f32 %v7331_v34, %v8524_v51 }
 0x91f   :  { %4814 = vst.msk [vmem:[#allocation4 + $0x10] sm:$0xff] %vm722_vm2, %v4801_v36  ;;  %7169 = vmatmul.mubr.msk.f32.vlgmr.msra.gmra.mxu0 %vm722_vm2, %v4801_v36 }
 0x920   :  { %v7333_v37 = vpop.eup %7332  ;;  %7177 = vmatpush3.msra.mxu0 %v5125_v20  ;;  %7178 = vmatprep.mubr.msk.f32.mxu0 %vm7396_vm1, %v7395_v2 }
 0x921   :  { %v4803_v62 = vmul.f32 %v7333_v37, %v8528_v59  ;;  %7186 = vmatprep.subr.mxu0 %v7395_v2  ;;  %v6452_v59 = vld [vmem:[%s8746_s5 + $0x70] sm:$0xff] }
 0x922   :  { %v4795_v27 = vpop.xlane.xlu0 %4794 }
 0x923   :  { %7338 = vrcp.f32 %v4795_v27  ;;  %v4792_v32 = vpop.xlane.xlu1 %4791  ;;  %4815 = vst.msk [vmem:[#allocation4 + $0x18] sm:$0xff] %vm722_vm2, %v4803_v62  ;;  %7174 = vmatmul.mubr.msk.f32.vlgmr.msra.gmra.mxu1 %vm722_vm2, %v4803_v62 }
 0x924   :  { %7340 = vrcp.f32 %v4792_v32  ;;  %7182 = vmatpush3.msra.mxu1 %v5201_v21  ;;  %7183 = vmatprep.mubr.msk.f32.mxu1 %vm7396_vm1, %v7395_v2 }
 0x925   :  { %7191 = vmatprep.subr.mxu1 %v7395_v2 }
 0x926   :  { %v7335_v55 = vpop.eup %7334  ;;  %v5277_v40 = vpop.permute.xlu0 %5276 }
 0x927   :  { %v7337_v38 = vpop.eup %7336  ;;  %v4807_v17 = vmul.f32 %v7335_v55, %v8534_v11  ;;  %v5353_v9 = vpop.permute.xlu1 %5352 }
 0x928   :  { %v4805_v39 = vmul.f32 %v7337_v38, %v8536_v49 }
 0x929   :  { %4817 = vst.msk [vmem:[#allocation4 + $0x28] sm:$0xff] %vm722_vm2, %v4807_v17  ;;  %7184 = vmatmul.mubr.msk.f32.vlgmr.msra.gmra.mxu1 %vm722_vm2, %v4807_v17 }
 0x92a   :  { %4816 = vst.msk [vmem:[#allocation4 + $0x20] sm:$0xff] %vm722_vm2, %v4805_v39  ;;  %7179 = vmatmul.mubr.msk.f32.vlgmr.msra.gmra.mxu0 %vm722_vm2, %v4805_v39  ;;  %7192 = vmatpush3.msra.mxu1 %v5353_v9 }
 0x92b   :  { %7187 = vmatpush3.msra.mxu0 %v5277_v40  ;;  %7188 = vmatprep.mubr.msk.f32.mxu0 %vm7396_vm1, %v7395_v2 }
 0x92c   :  { %7193 = vmatprep.mubr.msk.f32.mxu1 %vm7396_vm1, %v7395_v2  ;;  %7196 = vmatprep.subr.mxu0 %v7395_v2 }
 0x92d   :  { %7201 = vmatprep.subr.mxu1 %v7395_v2 }
 0x930   :  { %v7339_v16 = vpop.eup %7338 }
 0x931   :  { %v7341_v43 = vpop.eup %7340  ;;  %v4811_v28 = vmul.f32 %v7339_v16, %v8542_v13 }
 0x932   :  { %v4809_v3 = vmul.f32 %v7341_v43, %v8544_v26 }
 0x933   :  { %4819 = vst.msk [vmem:[#allocation4 + $0x38] sm:$0xff] %vm722_vm2, %v4811_v28  ;;  %7194 = vmatmul.mubr.msk.f32.vlgmr.msra.gmra.mxu1 %vm722_vm2, %v4811_v28 }
 0x934   :  { %4818 = vst.msk [vmem:[#allocation4 + $0x30] sm:$0xff] %vm722_vm2, %v4809_v3  ;;  %7189 = vmatmul.mubr.msk.f32.vlgmr.msra.gmra.mxu0 %vm722_vm2, %v4809_v3  ;;  %7203 = vmatprep.mubr.msk.f32.mxu1 %vm7396_vm1, %v7395_v2 }
 0x935   :  { %7198 = vmatprep.mubr.msk.f32.mxu0 %vm7396_vm1, %v7395_v2  ;;  %7197 = vmatpush3.msra.mxu0 %v6446_v45 }
 0x936   :  { %7202 = vmatpush3.msra.mxu1 %v6447_v61  ;;  %7206 = vmatprep.subr.mxu0 %v7395_v2 }
 0x937   :  { %7211 = vmatprep.subr.mxu1 %v7395_v2 }
 0x9d5   :  { %v4968_v47 = vpop.f32.mrf.mxu1 }
 0x9d6   :  { %v4892_v0 = vpop.f32.mrf.mxu0  ;;  %7204 = vmatmul.mubr.msk.f32.vlgmr.msra.gmra.mxu1 %vm722_vm2, %v4968_v47 }
 0x9d7   :  { %7199 = vmatmul.mubr.msk.f32.vlgmr.msra.gmra.mxu0 %vm722_vm2, %v4892_v0  ;;  %v7165_v6 = vpop.f32.mrf.mxu1  ;;  %7212 = vmatpush3.msra.mxu1 %v6449_v25 }
 0x9d8   :  { %v7160_v5 = vpop.f32.mrf.mxu0  ;;  %7207 = vmatpush3.msra.mxu0 %v6448_v63  ;;  %7208 = vmatprep.mubr.msk.f32.mxu0 %vm7396_vm1, %v7395_v2 }
 0x9d9   :  { %7213 = vmatprep.mubr.msk.f32.mxu1 %vm7396_vm1, %v7395_v2  ;;  %7216 = vmatprep.subr.mxu0 %v7395_v2 }
 0x9da   :  { %7221 = vmatprep.subr.mxu1 %v7395_v2 }
 0x9df   :  { %v5044_v50 = vpop.f32.mrf.mxu0 }
 0x9e0   :  { %7209 = vmatmul.mubr.msk.f32.vlgmr.msra.gmra.mxu0 %vm722_vm2, %v5044_v50 }
 0x9e1   :  { %v7170_v51 = vpop.f32.mrf.mxu0  ;;  %7217 = vmatpush3.msra.mxu0 %v6450_v48  ;;  %7218 = vmatprep.mubr.msk.f32.mxu0 %vm7396_vm1, %v7395_v2 }
 0x9e2   :  { %7226 = vmatprep.subr.mxu0 %v7395_v2 }
 0x9e3   :  { %v5120_v53 = vpop.f32.mrf.mxu1 }
 0x9e4   :  { %7214 = vmatmul.mubr.msk.f32.vlgmr.msra.gmra.mxu1 %vm722_vm2, %v5120_v53  ;;  %v6073_v53 = vld [vmem:[%s8748_s7 + $0x8] sm:$0xff] }
 0x9e5   :  { %v7175_v54 = vpop.f32.mrf.mxu1  ;;  %7222 = vmatpush3.msra.mxu1 %v6451_v52  ;;  %7223 = vmatprep.mubr.msk.f32.mxu1 %vm7396_vm1, %v7395_v2  ;;  %v6074_v52 = vld [vmem:[%s8748_s7 + $0x10] sm:$0xff] }
 0x9e6   :  { %7231 = vmatprep.subr.mxu1 %v7395_v2  ;;  %v6072_v54 = vld [vmem:[%s8748_s7] sm:$0xff] }
 0x9e9   :  { %v5272_v58 = vpop.f32.mrf.mxu1 }
 0x9ea   :  { %v5196_v4 = vpop.f32.mrf.mxu0  ;;  %7224 = vmatmul.mubr.msk.f32.vlgmr.msra.gmra.mxu1 %vm722_vm2, %v5272_v58  ;;  %v6172_v58 = vld [vmem:[%s8750_s9 + $0x30] sm:$0xff] }
 0x9eb   :  { %7219 = vmatmul.mubr.msk.f32.vlgmr.msra.gmra.mxu0 %vm722_vm2, %v5196_v4  ;;  %v7185_v7 = vpop.f32.mrf.mxu1  ;;  %7232 = vmatpush3.msra.mxu1 %v6453_v57  ;;  %v6173_v57 = vld [vmem:[%s8750_s9 + $0x38] sm:$0xff]  ;;  %v6170_v4 = vld [vmem:[%s8750_s9 + $0x20] sm:$0xff] }
 0x9ec   :  { %v7180_v8 = vpop.f32.mrf.mxu0  ;;  %7227 = vmatpush3.msra.mxu0 %v6452_v59  ;;  %7228 = vmatprep.mubr.msk.f32.mxu0 %vm7396_vm1, %v7395_v2  ;;  %v6171_v59 = vld [vmem:[%s8750_s9 + $0x28] sm:$0xff] }
 0x9ed   :  { %7233 = vmatprep.mubr.msk.f32.mxu1 %vm7396_vm1, %v7395_v2  ;;  %7247 = vmatprep.subr.mxu1 %v6173_v57 }
 0x9f3   :  { %v5424_v46 = vpop.f32.mrf.mxu1 }
 0x9f4   :  { %v5348_v10 = vpop.f32.mrf.mxu0  ;;  %7234 = vmatmul.mubr.msk.f32.vlgmr.msra.gmra.mxu1 %vm722_vm2, %v5424_v46 }
 0x9f5   :  { %7229 = vmatmul.mubr.msk.f32.vlgmr.msra.gmra.mxu0 %vm722_vm2, %v5348_v10  ;;  %v7195_v11 = vpop.f32.mrf.mxu1  ;;  %7248 = vmatpush3.msra.mxu1 %v6173_v57  ;;  %v6062_v10 = vsub.s32 5, %v7911_v35 }
 0x9f6   :  { %v7190_v49 = vpop.f32.mrf.mxu0  ;;  %7249 = vmatprep.subr.mxu1 %v6172_v58  ;;  %v6068_v11 = vsub.s32 6, %v7911_v35 }
 0x9f7   :  { %7250 = vmatpush3.msra.mxu1 %v6172_v58  ;;  %v6063_v49 = vrot.slane %v8657_v24, %v6062_v10 }
 0x9f8   :  { %7251 = vmatprep.subr.mxu1 %v6171_v59 }
 0x9f9   :  { %7252 = vmatpush3.msra.mxu1 %v6171_v59 }
 0x9fa   :  { %7253 = vmatprep.subr.mxu1 %v6170_v4 }
 0x9fb   :  { %7254 = vmatpush3.msra.mxu1 %v6170_v4 }
 0xa96   :  { %v5570_v42 = vpop.f32.mrf.mxu1 }
 0xa97   :  { %v5497_v12 = vpop.f32.mrf.mxu0  ;;  %v6013_v15 = vsel %vm136_vm0, %v5570_v42, 0.0 }
 0xa98   :  { %v7205_v13 = vpop.f32.mrf.mxu1  ;;  %v6012_v14 = vsel %vm136_vm0, %v5497_v12, 0.0 }
 0xa99   :  { %v7200_v26 = vpop.f32.mrf.mxu0  ;;  %v6014_v20 = vadd.f32 %v6013_v15, %v6012_v14 }
 0xa9a   :  { %v6069_v26 = vrot.slane %v8657_v24, %v6068_v11 }
 0xaa0   :  { %v5643_v18 = vpop.f32.mrf.mxu0 }
 0xaa1   :  { %v6015_v2 = vsel %vm136_vm0, %v5643_v18, 0.0 }
 0xaa2   :  { %v7210_v21 = vpop.f32.mrf.mxu0  ;;  %v6016_v22 = vadd.f32 %v6015_v2, %v6014_v20 }
 0xaa4   :  { %v5716_v23 = vpop.f32.mrf.mxu1 }
 0xaa5   :  { %v6017_v29 = vsel %vm136_vm0, %v5716_v23, 0.0  ;;  %v6169_v23 = vld [vmem:[%s8750_s9 + $0x18] sm:$0xff] }
 0xaa6   :  { %v6018_v30 = vadd.f32 %v6017_v29, %v6016_v22  ;;  %v7215_v31 = vpop.f32.mrf.mxu1  ;;  %7255 = vmatprep.subr.mxu1 %v6169_v23  ;;  %v6167_v29 = vld [vmem:[%s8750_s9 + $0x8] sm:$0xff] }
 0xaa7   :  { %7256 = vmatpush3.msra.mxu1 %v6169_v23  ;;  %v6494_v31 = vld [vmem:[%s8749_s8] ss:$0 sm:$0xff]  ;;  %s7399_s8 = smov [#allocation4]  }
 0xaa8   :  { %v6030_v44 = vadd.f32 %v6029_v60, %v6018_v30  ;;  %v6166_v30 = vld [vmem:[%s8750_s9] sm:$0xff] }
 0xaaa   :  { %v5862_v1 = vpop.f32.mrf.mxu1  ;;  %v6032_v56 = vadd.f32 %v6030_v44, %v8217_v41 }
 0xaab   :  { %v5789_v34 = vpop.f32.mrf.mxu0  ;;  %v6020_v32 = vsel %vm136_vm0, %v5862_v1, 0.0 }
 0xaac   :  { %v7225_v36 = vpop.f32.mrf.mxu1  ;;  %v6034_v37 = vsel %vm136_vm0, %v6032_v56, 0.0  ;;  %v6019_v27 = vsel %vm136_vm0, %v5789_v34, 0.0 }
 0xaad   :  { %v7220_v62 = vpop.f32.mrf.mxu0  ;;  %6035 = vadd.xlane.f32.xlu0 %v6034_v37  ;;  %v6021_v38 = vadd.f32 %v6020_v32, %v6019_v27 }
 0xaae   :  { %v6176_v62 = vsub.s32 2, %v7911_v35 }
 0xab0   :  { %v6177_v27 = vrot.slane %v8657_v24, %v6176_v62 }
 0xab4   :  { %v6008_v55 = vpop.f32.mrf.mxu1 }
 0xab5   :  { %v5935_v17 = vpop.f32.mrf.mxu0  ;;  %v6024_v41 = vsel %vm136_vm0, %v6008_v55, 0.0 }
 0xab6   :  { %v6022_v39 = vsel %vm136_vm0, %v5935_v17, 0.0  ;;  %v7235_v9 = vpop.f32.mrf.mxu1 }
 0xab7   :  { %v6023_v40 = vadd.f32 %v6022_v39, %v6021_v38  ;;  %v7230_v16 = vpop.f32.mrf.mxu0 }
 0xab9   :  { %v6025_v43 = vadd.f32 %v6024_v41, %v6023_v40 }
 0xabb   :  { %v6031_v28 = vadd.f32 %v6029_v60, %v6025_v43  ;;  %v6168_v60 = vld [vmem:[%s8750_s9 + $0x10] sm:$0xff]  ;;  %s6319_s9 = sshll.u32 %s7399_s8, 4  ;;  %s6320_s9 = int_to_ptr.vmem [resolvable:$true] %s6319_s9 }
 0xabc   :  { %7257 = vmatprep.subr.mxu1 %v6168_v60  ;;  %s7351_s24 = scalar_lea.vmem %s6320_s9, 1024  ;;  %p7356_p1 = scmp.lt.s32.totalorder %s6320_s9, %s6320_s9 }
 0xabd   :  { %v6033_v3 = vadd.f32 %v6031_v28, %v8282_v33  ;;  %v6075_v33 = vld [vmem:[%s8748_s7 + $0x18] sm:$0xff]  ;;  %7258 = vmatpush3.msra.mxu1 %v6168_v60  ;;  %p7352_p0 = scmp.ne.s32.totalorder %s6320_s9, %s7351_s24  ;;  %p7357_p2 = scmp.lt.s32.totalorder %s7351_s24, %s7351_s24 }
 0xabe   :  { %7236 = vmatprep.subr.mxu0 %v6075_v33  ;;  %7259 = vmatprep.subr.mxu1 %v6167_v29 }
 0xabf   :  { %v6037_v45 = vsel %vm136_vm0, %v6033_v3, 0.0  ;;  %7237 = vmatpush3.msra.mxu0 %v6075_v33  ;;  %7260 = vmatpush3.msra.mxu1 %v6167_v29  ;;  %p7358_p3 = por %p7357_p2, %p7356_p1 }
 0xac0   :  { %6038 = vadd.xlane.f32.xlu1 %v6037_v45  ;;  %7238 = vmatprep.subr.mxu0 %v6074_v52 }
 0xac1   :  { %7239 = vmatpush3.msra.mxu0 %v6074_v52  ;;  %7261 = vmatprep.subr.mxu1 %v6166_v30  ;;  %p7359_p4 = pnand %p7358_p3, %p7352_p0 }
 0xac2   :  { %7240 = vmatprep.subr.mxu0 %v6073_v53  ;;  %7262 = vmatpush3.msra.mxu1 %v6166_v30 }
 0xac3   :  { %7241 = vmatpush3.msra.mxu0 %v6073_v53 }
 0xac4   :  { %7242 = vmatprep.subr.mxu0 %v6072_v54 }
 0xac5   :  { %7243 = vmatpush3.msra.mxu0 %v6072_v54 }
 0xb36   :  { %v6036_v61 = vpop.xlane.xlu0 %6035 }
 0xb37   :  { %v6040_v25 = vmul.f32 0.03125, %v6036_v61 }
 0xb39   :  { %v6042_v47 = vsub.f32 %v6032_v56, %v6040_v25 }
 0xb3b   :  { %v6044_v63 = vmul.f32 %v6042_v47, %v6042_v47 }
 0xb3d   :  { %v6046_v0 = vsel %vm136_vm0, %v6044_v63, 0.0 }
 0xb3e   :  { %6047 = vadd.xlane.f32.xlu0 %v6046_v0 }
 0xb49   :  { %v6039_v6 = vpop.xlane.xlu1 %6038 }
 0xb4a   :  { %v6041_v5 = vmul.f32 0.03125, %v6039_v6 }
 0xb4c   :  { %v6043_v48 = vsub.f32 %v6033_v3, %v6041_v5 }
 0xb4e   :  { %v6045_v50 = vmul.f32 %v6043_v48, %v6043_v48 }
 0xb50   :  { %v6049_v51 = vsel %vm136_vm0, %v6045_v50, 0.0 }
 0xb51   :  { %6050 = vadd.xlane.f32.xlu0 %v6049_v51 }
 0xbc7   :  { %v6048_v7 = vpop.xlane.xlu0 %6047 }
 0xbc8   :  { %v6052_v8 = vmul.f32 0.03125, %v6048_v7 }
 0xbca   :  { %v6054_v46 = vadd.f32 1e-05, %v6052_v8 }
 0xbcc   :  { %7342 = vrsqrt.f32 %v6054_v46 }
 0xbd9   :  { %v7343_v42 = vpop.eup %7342 }
 0xbda   :  { %v6051_v12 = vpop.xlane.xlu0 %6050  ;;  %v6058_v13 = vmul.f32 %v7343_v42, %v6042_v47 }
 0xbdb   :  { %v6053_v14 = vmul.f32 0.03125, %v6051_v12 }
 0xbdc   :  { %v6064_v15 = vmul.f32 %v6063_v49, %v6058_v13 }
 0xbdd   :  { %v6055_v18 = vadd.f32 1e-05, %v6053_v14 }
 0xbde   :  { %v6070_v19 = vadd.f32 %v6069_v26, %v6064_v15 }
 0xbdf   :  { %7344 = vrsqrt.f32 %v6055_v18 }
 0xbe0   :  { %7244 = vmatprep.mubr.msk.f32.mxu0 %vm136_vm0, %v6070_v19 }
 0xbec   :  { %v7345_v2 = vpop.eup %7344 }
 0xbed   :  { %v6059_v20 = vmul.f32 %v7345_v2, %v6043_v48 }
 0xbef   :  { %v6065_v21 = vmul.f32 %v6063_v49, %v6059_v20 }
 0xbf1   :  { %v6071_v22 = vadd.f32 %v6069_v26, %v6065_v21 }
 0xbf3   :  { %7245 = vmatmul.mubr.msk.f32.vlgmr.msra.gmra.mxu0 %vm136_vm0, %v6071_v22 }
 0xcb3   :  { %v7246_v44 = vpop.f32.mrf.mxu0 }
 0xcb4   :  { %v6161_v1 = vadd.f32 %v7246_v44, %v6494_v31 }
 0xcb5   :  { %v6155_v56 = vpop.f32.mrf.mxu0 }
 0xcb6   :  { %v6156_v34 = vadd.f32 %v6494_v31, %v6155_v56  ;;  %v6165_v37 = vmax.f32 %v6161_v1, 0.0 }
 0xcb8   :  { %v6164_v36 = vmax.f32 %v6156_v34, 0.0 }
 0xcba   :  { %7263 = vmatprep.mubr.msk.f32.mxu1 %vm6178_vm3, %v6164_v36 }
 0xcbb   :  { %7264 = vmatmul.mubr.msk.f32.vlgmr.msra.gmra.mxu1 %vm6178_vm3, %v6165_v37 }
 0xd7b   :  { %v7265_v32 = vpop.f32.mrf.mxu1 }
 0xd7c   :  { %v6257_v55 = vadd.f32 %v7265_v32, %v6177_v27 }
 0xd7d   :  { %v6251_v38 = vpop.f32.mrf.mxu1 }
 0xd7e   :  { %v6261_v17 = vadd.f32 %v6257_v55, %v6071_v22  ;;  %v6252_v39 = vadd.f32 %v6251_v38, %v6177_v27 }
 0xd80   :  { %v6260_v9 = vadd.f32 %v6252_v39, %v6070_v19  ;;  %v6265_v40 = vsel %vm136_vm0, %v6261_v17, 0.0 }
 0xd81   :  { %6266 = vadd.xlane.f32.xlu0 %v6265_v40 }
 0xd82   :  { %v6262_v16 = vsel %vm136_vm0, %v6260_v9, 0.0 }
 0xd83   :  { %6263 = vadd.xlane.f32.xlu1 %v6262_v16 }
 0xe0a   :  { %v6267_v41 = vpop.xlane.xlu0 %6266 }
 0xe0b   :  { %v6269_v43 = vmul.f32 0.03125, %v6267_v41 }
 0xe0c   :  { %v6264_v28 = vpop.xlane.xlu1 %6263 }
 0xe0d   :  { %v6271_v3 = vsub.f32 %v6261_v17, %v6269_v43  ;;  %v6268_v45 = vmul.f32 0.03125, %v6264_v28 }
 0xe0f   :  { %v6270_v61 = vsub.f32 %v6260_v9, %v6268_v45  ;;  %v6273_v25 = vmul.f32 %v6271_v3, %v6271_v3 }
 0xe11   :  { %v6277_v47 = vsel %vm136_vm0, %v6273_v25, 0.0  ;;  %v6272_v63 = vmul.f32 %v6270_v61, %v6270_v61 }
 0xe12   :  { %6278 = vadd.xlane.f32.xlu0 %v6277_v47 }
 0xe13   :  { %v6274_v0 = vsel %vm136_vm0, %v6272_v63, 0.0 }
 0xe14   :  { %6275 = vadd.xlane.f32.xlu1 %v6274_v0 }
 0xe15   :  { %7362 = shalt.err (!%p7359_p4)
}
 0xe16   :  { %s7400_s25 = smov 128   ;;  %s7401_s26 = smov 8   ;;  %v6290_v52 = vsub.s32 7, %v7911_v35  ;;  %v6499_v59 = vld [vmem:[%s8751_s10 + $0x8] ss:$0 sm:$0xff] }
 0xe17   :  { %6325 = dma.vmem_to_hbm [thread:$0]  %s6320_s9, 1024, %s8753_s12, [#allocation5], %s7400_s25, %s7400_s25, %s7401_s26  }
 0xe18   :  { %v6291_v53 = vrot.slane %v8657_v24, %v6290_v52  ;;  %s7402_s12 = smov [#allocation2]  }
 0xe19   :  { %s6307_s3 = sshll.u32 %s7402_s12, 4  ;;  %s6308_s3 = int_to_ptr.vmem [resolvable:$true] %s6307_s3 }
 0xe1a   :  { %s7371_s20 = scalar_lea.vmem %s6308_s3, 256  ;;  %p7376_p6 = scmp.lt.s32.totalorder %s6308_s3, %s6308_s3 }
 0xe1b   :  { %p7372_p5 = scmp.ne.s32.totalorder %s6308_s3, %s7371_s20  ;;  %p7377_p7 = scmp.lt.s32.totalorder %s7371_s20, %s7371_s20 }
 0xe1d   :  { %p7378_p8 = por %p7377_p7, %p7376_p6 }
 0xe1f   :  { %p7379_p9 = pnand %p7378_p8, %p7372_p5 }
 0xe9b   :  { %v6279_v6 = vpop.xlane.xlu0 %6278 }
 0xe9c   :  { %v6281_v5 = vmul.f32 0.03125, %v6279_v6 }
 0xe9d   :  { %v6276_v48 = vpop.xlane.xlu1 %6275 }
 0xe9e   :  { %v6283_v50 = vadd.f32 1e-05, %v6281_v5  ;;  %v6280_v51 = vmul.f32 0.03125, %v6276_v48 }
 0xea0   :  { %7346 = vrsqrt.f32 %v6283_v50  ;;  %v6282_v33 = vadd.f32 1e-05, %v6280_v51 }
 0xea2   :  { %7348 = vrsqrt.f32 %v6282_v33 }
 0xead   :  { %v7347_v54 = vpop.eup %7346 }
 0xeae   :  { %v6287_v57 = vmul.f32 %v7347_v54, %v6271_v3 }
 0xeaf   :  { %v7349_v58 = vpop.eup %7348 }
 0xeb0   :  { %v6286_v4 = vmul.f32 %v7349_v58, %v6270_v61  ;;  %v6293_v7 = vmul.f32 %v6291_v53, %v6287_v57 }
 0xeb2   :  { %v6292_v8 = vmul.f32 %v6291_v53, %v6286_v4  ;;  %v6299_v46 = vadd.f32 %v6499_v59, %v6293_v7 }
 0xeb4   :  { %v6298_v10 = vadd.f32 %v6499_v59, %v6292_v8  ;;  %6301 = vst.msk [vmem:[#allocation2 + $0x8] sm:$0xff] %vm136_vm0, %v6299_v46 }
 0xeb6   :  { %6300 = vst.msk [vmem:[#allocation2] sm:$0xff] %vm136_vm0, %v6298_v10 }
 0xeb7   :  { %7382 = shalt.err (!%p7379_p9)
}
 0xeb8   :  { %6313 = dma.vmem_to_hbm [thread:$0]  %s6308_s3, 256, %s8752_s11, [#allocation3], %s7400_s25, %s7400_s25, %s7401_s26  }
 0xeb9   :  { %7391 = dma.done.wait [#allocation3], 256  }
 0xeba   :  { %7392 = vsyncadd [#allocation3], 4294967040 }
 0xebb   :  { %7393 = dma.done.wait [#allocation5], 1024  }
 0xebc   :  { %7394 = vsyncadd [#allocation5], 4294966272 }
 0xebd   :  { %6332 = vsyncpa [#allocation3], 1 }
 0xebe   :  { %6333 = vsyncpa [#allocation5], 1 }

</bundles_post_ra>
